<compile_context>
chip_gen: v5e
topology: v5e:2x2
jax: 0.10.0
libtpu: 0.0.40
codegen_flags: <defaults>
</compile_context>

<pallas_src>
import jax
import jax.numpy as jnp
from jax.experimental import pallas as pl
from jax.experimental.pallas import tpu as pltpu

# ---------------- small-model config (scaled-down but same structure) --------
VOCAB_SIZE = 65
VOCAB_PAD  = 128          # lane-dense logits (pad 65 -> 128, slice back outside)
N_EMBD     = 32
N_HEAD     = 4
HEAD_SIZE  = N_EMBD // N_HEAD
N_LAYER    = 2
BLOCK_SIZE = 16           # max context length (positional table rows)
LN_EPS     = 1e-5         # PyTorch nn.LayerNorm default
NEG_INF    = -1e30


def _layer_norm_2d(x2d, g, b):
    # x2d: (N, C); g, b: (1, C). Biased variance, matching nn.LayerNorm.
    mu  = jnp.mean(x2d, axis=-1, keepdims=True)
    var = jnp.mean((x2d - mu) ** 2, axis=-1, keepdims=True)
    return (x2d - mu) * jax.lax.rsqrt(var + LN_EPS) * g + b


# ---------------------------- fused Pallas kernel ----------------------------
def gpt_kernel(x_ref, mask_ref,
               ln1g_ref, ln1b_ref, wq_ref, wk_ref, wv_ref, wp_ref, bp_ref,
               ln2g_ref, ln2b_ref, w1_ref, b1_ref, w2_ref, b2_ref,
               lnfg_ref, lnfb_ref, lmw_ref, lmb_ref,
               logits_ref,
               xf_ref):
    """Grid axis = layer index. xf_ref (VMEM scratch) carries activations."""
    l   = pl.program_id(0)
    n_l = pl.num_programs(0)
    B, T, C = x_ref.shape
    H, _, hd = wq_ref.shape          # per-head weight slab (H, C, hd)
    BT = B * T

    # ---- first layer: load the embeddings into the resident activation ----
    @pl.when(l == 0)
    def _():
        xf_ref[...] = x_ref[...].astype(jnp.float32).reshape(BT, C)

    x2 = xf_ref[...]                                  # (BT, C) f32, resident

    # ---------------- self-attention branch ---------------------------------
    h  = _layer_norm_2d(x2, ln1g_ref[...], ln1b_ref[...])     # f32
    hb = h.astype(jnp.bfloat16)                                # MXU operand
    mask = mask_ref[...]                                       # (T, T) additive

    wq = wq_ref[...].astype(jnp.bfloat16)             # (H, C, hd)
    wk = wk_ref[...].astype(jnp.bfloat16)
    wv = wv_ref[...].astype(jnp.bfloat16)
    wp = wp_ref[...].astype(jnp.bfloat16)             # (H, hd, C)

    scale = jnp.float32(hd) ** -0.5
    sa = jnp.zeros((BT, C), jnp.float32) + bp_ref[...]         # proj bias

    for hh in range(H):  # static unroll; leading-dim slab index -> no lane slicing
        q = jnp.dot(hb, wq[hh], preferred_element_type=jnp.float32).reshape(B, T, hd)
        k = jnp.dot(hb, wk[hh], preferred_element_type=jnp.float32).reshape(B, T, hd)
        v = jnp.dot(hb, wv[hh], preferred_element_type=jnp.float32).reshape(B, T, hd)

        wei = jnp.einsum('bqd,bkd->bqk',
                         q.astype(jnp.bfloat16), k.astype(jnp.bfloat16),
                         preferred_element_type=jnp.float32) * scale
        wei = wei + mask[None, :, :]                    # causal (additive -inf)
        m   = jnp.max(wei, axis=-1, keepdims=True)
        p   = jnp.exp(wei - m)
        p   = p * pl.reciprocal(jnp.sum(p, axis=-1, keepdims=True), approx=True)

        oh = jnp.einsum('bqk,bkd->bqd',
                        p.astype(jnp.bfloat16), v.astype(jnp.bfloat16),
                        preferred_element_type=jnp.float32)    # (B, T, hd)
        # concat-then-proj == sum over heads of out_h @ wp_head
        sa = sa + jnp.dot(oh.reshape(BT, hd).astype(jnp.bfloat16), wp[hh],
                          preferred_element_type=jnp.float32)

    x2 = x2 + sa                                       # residual 1

    # ---------------- feed-forward branch ------------------------------------
    h2 = _layer_norm_2d(x2, ln2g_ref[...], ln2b_ref[...])
    f = jnp.dot(h2.astype(jnp.bfloat16), w1_ref[...].astype(jnp.bfloat16),
                preferred_element_type=jnp.float32) + b1_ref[...]
    f = jnp.maximum(f, 0.0)                            # ReLU
    f = jnp.dot(f.astype(jnp.bfloat16), w2_ref[...].astype(jnp.bfloat16),
                preferred_element_type=jnp.float32) + b2_ref[...]
    x2 = x2 + f                                        # residual 2

    xf_ref[...] = x2                                   # carry to next layer

    # ---------------- final LayerNorm + lm_head (last grid step only) --------
    @pl.when(l == n_l - 1)
    def _():
        hf = _layer_norm_2d(x2, lnfg_ref[...], lnfb_ref[...])
        logits = jnp.dot(hf.astype(jnp.bfloat16), lmw_ref[...].astype(jnp.bfloat16),
                         preferred_element_type=jnp.float32) + lmb_ref[...]
        logits_ref[...] = logits.reshape(B, T, logits.shape[-1]).astype(logits_ref.dtype)


# ---------------------------- wrapper ----------------------------------------
def gpt_forward(idx, params, targets=None):
    """Mirrors GPTLanguageModel.forward (targets=None path -> loss is None)."""
    B, T = idx.shape
    C = N_EMBD

    # embedding gathers (JAX glue)
    tok_emb = jnp.take(params['tok_emb'], idx, axis=0)          # (B, T, C)
    pos_emb = params['pos_emb'][:T]                             # (T, C)
    x = (tok_emb + pos_emb[None, :, :]).astype(jnp.float32)

    # causal additive mask, built once (hoisted out of the kernel)
    row = jnp.arange(T)[:, None]
    col = jnp.arange(T)[None, :]
    mask = jnp.where(row >= col, 0.0, NEG_INF).astype(jnp.float32)   # (T, T)

    # lane-dense lm_head: pad vocab dim to 128 lanes
    lm_w = jnp.pad(params['lm_w'], ((0, 0), (0, VOCAB_PAD - VOCAB_SIZE)))
    lm_b = jnp.pad(params['lm_b'], ((0, 0), (0, VOCAB_PAD - VOCAB_SIZE)))

    p = params
    args = (x, mask,
            p['ln1_g'], p['ln1_b'], p['wq'], p['wk'], p['wv'], p['wp'], p['bp'],
            p['ln2_g'], p['ln2_b'], p['w1'], p['b1'], p['w2'], p['b2'],
            p['lnf_g'], p['lnf_b'], lm_w, lm_b)

    def const_spec(shape):
        # full block, same block every grid step (fetched once)
        return pl.BlockSpec(shape, lambda l, _n=len(shape): (0,) * _n)

    def layer_spec(shape):
        # leading N_LAYER axis squeezed; layer l's slab auto-DMA'd per grid step
        rest = tuple(shape[1:])
        return pl.BlockSpec((None,) + rest,
                            lambda l, _n=len(rest): (l,) + (0,) * _n)

    in_specs = [
        const_spec((B, T, C)), const_spec((T, T)),
        layer_spec(p['ln1_g'].shape), layer_spec(p['ln1_b'].shape),
        layer_spec(p['wq'].shape), layer_spec(p['wk'].shape), layer_spec(p['wv'].shape),
        layer_spec(p['wp'].shape), layer_spec(p['bp'].shape),
        layer_spec(p['ln2_g'].shape), layer_spec(p['ln2_b'].shape),
        layer_spec(p['w1'].shape), layer_spec(p['b1'].shape),
        layer_spec(p['w2'].shape), layer_spec(p['b2'].shape),
        const_spec(p['lnf_g'].shape), const_spec(p['lnf_b'].shape),
        const_spec(lm_w.shape), const_spec(lm_b.shape),
    ]

    logits_pad = pl.pallas_call(
        gpt_kernel,
        out_shape=jax.ShapeDtypeStruct((B, T, VOCAB_PAD), jnp.float32),
        grid=(N_LAYER,),
        in_specs=in_specs,
        out_specs=pl.BlockSpec((B, T, VOCAB_PAD), lambda l: (0, 0, 0)),
        scratch_shapes=[pltpu.VMEM((B * T, C), jnp.float32)],   # resident activations
        compiler_params=pltpu.CompilerParams(
            dimension_semantics=("arbitrary",)),                 # layer axis is sequential
    )(*args)

    logits = logits_pad[:, :, :VOCAB_SIZE]
    # TODO(synk): cross-entropy loss branch (targets is not None) not implemented.
    return logits, None


# ---------------------------- parameter init ---------------------------------
def init_params(key):
    def lin_w(k, shape, fan_in):
        bound = 1.0 / (fan_in ** 0.5)
        return jax.random.uniform(k, shape, jnp.float32, -bound, bound)

    keys = iter(jax.random.split(key, 16))
    params = {
        'tok_emb': jax.random.normal(next(keys), (VOCAB_SIZE, N_EMBD), jnp.float32) * 0.02,
        'pos_emb': jax.random.normal(next(keys), (BLOCK_SIZE, N_EMBD), jnp.float32) * 0.02,
        'lnf_g':   jnp.ones((1, N_EMBD), jnp.float32),
        'lnf_b':   jnp.zeros((1, N_EMBD), jnp.float32),
        'lm_w':    lin_w(next(keys), (N_EMBD, VOCAB_SIZE), N_EMBD),
        'lm_b':    jnp.zeros((1, VOCAB_SIZE), jnp.float32),
        # per-layer weights stacked along a leading N_LAYER axis, Q/K/V/proj
        # additionally pre-split per head (no lane slicing in-kernel).
        'ln1_g': jnp.ones((N_LAYER, 1, N_EMBD), jnp.float32),
        'ln1_b': jnp.zeros((N_LAYER, 1, N_EMBD), jnp.float32),
        'wq': lin_w(next(keys), (N_LAYER, N_HEAD, N_EMBD, HEAD_SIZE), N_EMBD),
        'wk': lin_w(next(keys), (N_LAYER, N_HEAD, N_EMBD, HEAD_SIZE), N_EMBD),
        'wv': lin_w(next(keys), (N_LAYER, N_HEAD, N_EMBD, HEAD_SIZE), N_EMBD),
        'wp': lin_w(next(keys), (N_LAYER, N_HEAD, HEAD_SIZE, N_EMBD), N_HEAD * HEAD_SIZE),
        'bp': jnp.zeros((N_LAYER, 1, N_EMBD), jnp.float32),
        'ln2_g': jnp.ones((N_LAYER, 1, N_EMBD), jnp.float32),
        'ln2_b': jnp.zeros((N_LAYER, 1, N_EMBD), jnp.float32),
        'w1': lin_w(next(keys), (N_LAYER, N_EMBD, 4 * N_EMBD), N_EMBD),
        'b1': jnp.zeros((N_LAYER, 1, 4 * N_EMBD), jnp.float32),
        'w2': lin_w(next(keys), (N_LAYER, 4 * N_EMBD, N_EMBD), 4 * N_EMBD),
        'b2': jnp.zeros((N_LAYER, 1, N_EMBD), jnp.float32),
    }
    return params


if __name__ == "__main__":
    key = jax.random.PRNGKey(0)
    pkey, ikey = jax.random.split(key)
    params = init_params(pkey)

    B, T = 2, 8
    idx = jax.random.randint(ikey, (B, T), 0, VOCAB_SIZE, dtype=jnp.int32)

    logits, loss = gpt_forward(idx, params)
    logits = jax.block_until_ready(logits)
    assert logits.shape == (B, T, VOCAB_SIZE)
    assert loss is None
    print("KERNEL_OK")
</pallas_src>

<mosaic_0001>
module attributes {stable_mosaic.version = 11 : i64} {
  func.func @gpt_kernel(%arg0: i32, %arg1: memref<2x8x32xf32, #tpu.memory_space<vmem>>, %arg2: memref<8x8xf32, #tpu.memory_space<vmem>>, %arg3: memref<1x1x32xf32, #tpu.memory_space<vmem>>, %arg4: memref<1x1x32xf32, #tpu.memory_space<vmem>>, %arg5: memref<1x4x32x8xf32, #tpu.memory_space<vmem>>, %arg6: memref<1x4x32x8xf32, #tpu.memory_space<vmem>>, %arg7: memref<1x4x32x8xf32, #tpu.memory_space<vmem>>, %arg8: memref<1x4x8x32xf32, #tpu.memory_space<vmem>>, %arg9: memref<1x1x32xf32, #tpu.memory_space<vmem>>, %arg10: memref<1x1x32xf32, #tpu.memory_space<vmem>>, %arg11: memref<1x1x32xf32, #tpu.memory_space<vmem>>, %arg12: memref<1x32x128xf32, #tpu.memory_space<vmem>>, %arg13: memref<1x1x128xf32, #tpu.memory_space<vmem>>, %arg14: memref<1x128x32xf32, #tpu.memory_space<vmem>>, %arg15: memref<1x1x32xf32, #tpu.memory_space<vmem>>, %arg16: memref<1x32xf32, #tpu.memory_space<vmem>>, %arg17: memref<1x32xf32, #tpu.memory_space<vmem>>, %arg18: memref<32x128xf32, #tpu.memory_space<vmem>>, %arg19: memref<1x128xf32, #tpu.memory_space<vmem>>, %arg20: memref<2x8x128xf32, #tpu.memory_space<vmem>>, %arg21: memref<16x32xf32, #tpu.memory_space<vmem>>) attributes {dimension_semantics = [#tpu.dimension_semantics<arbitrary>], iteration_bounds = array<i64: 2>, scalar_prefetch = 0 : i64, scratch_operands = 1 : i64, tpu.core_type = #tpu.core_type<tc>, window_params = [{pipeline_mode = #tpu.pipeline_mode<synchronous>, transform_indices = @transform_0, window_bounds = array<i64: 2, 8, 32>}, {pipeline_mode = #tpu.pipeline_mode<synchronous>, transform_indices = @transform_1, window_bounds = array<i64: 8, 8>}, {transform_indices = @transform_2, window_bounds = array<i64: 1, 1, 32>}, {transform_indices = @transform_3, window_bounds = array<i64: 1, 1, 32>}, {transform_indices = @transform_4, window_bounds = array<i64: 1, 4, 32, 8>}, {transform_indices = @transform_5, window_bounds = array<i64: 1, 4, 32, 8>}, {transform_indices = @transform_6, window_bounds = array<i64: 1, 4, 32, 8>}, {transform_indices = @transform_7, window_bounds = array<i64: 1, 4, 8, 32>}, {transform_indices = @transform_8, window_bounds = array<i64: 1, 1, 32>}, {transform_indices = @transform_9, window_bounds = array<i64: 1, 1, 32>}, {transform_indices = @transform_10, window_bounds = array<i64: 1, 1, 32>}, {transform_indices = @transform_11, window_bounds = array<i64: 1, 32, 128>}, {transform_indices = @transform_12, window_bounds = array<i64: 1, 1, 128>}, {transform_indices = @transform_13, window_bounds = array<i64: 1, 128, 32>}, {transform_indices = @transform_14, window_bounds = array<i64: 1, 1, 32>}, {pipeline_mode = #tpu.pipeline_mode<synchronous>, transform_indices = @transform_15, window_bounds = array<i64: 1, 32>}, {pipeline_mode = #tpu.pipeline_mode<synchronous>, transform_indices = @transform_16, window_bounds = array<i64: 1, 32>}, {pipeline_mode = #tpu.pipeline_mode<synchronous>, transform_indices = @transform_17, window_bounds = array<i64: 32, 128>}, {pipeline_mode = #tpu.pipeline_mode<synchronous>, transform_indices = @transform_18, window_bounds = array<i64: 1, 128>}, {pipeline_mode = #tpu.pipeline_mode<synchronous>, transform_indices = @transform_19, window_bounds = array<i64: 2, 8, 128>}]} {
    %c0_i32 = arith.constant 0 : i32
    %0 = arith.cmpi eq, %arg0, %c0_i32 : i32
    %1 = arith.extui %0 : i1 to i32
    %c0_i32_0 = arith.constant 0 : i32
    %2 = arith.cmpi ne, %1, %c0_i32_0 : i32
    scf.if %2 {
      %c0_97 = arith.constant 0 : index
      %c0_98 = arith.constant 0 : index
      %c0_99 = arith.constant 0 : index
      %258 = vector.load %arg1[%c0_97, %c0_98, %c0_99] : memref<2x8x32xf32, #tpu.memory_space<vmem>>, vector<2x8x32xf32>
      %259 = vector.shape_cast %258 : vector<2x8x32xf32> to vector<16x32xf32>
      %c0_100 = arith.constant 0 : index
      %c0_101 = arith.constant 0 : index
      %260 = vector.load %arg21[%c0_100, %c0_101] : memref<16x32xf32, #tpu.memory_space<vmem>>, vector<16x32xf32>
      tpu.vector_store %arg21[%c0_100, %c0_101], %259 {strides = array<i32>} : memref<16x32xf32, #tpu.memory_space<vmem>>, vector<16x32xf32>,
    } else {
    }
    %c0 = arith.constant 0 : index
    %c0_1 = arith.constant 0 : index
    %3 = vector.load %arg21[%c0, %c0_1] : memref<16x32xf32, #tpu.memory_space<vmem>>, vector<16x32xf32>
    %c0_2 = arith.constant 0 : index
    %c0_3 = arith.constant 0 : index
    %c0_4 = arith.constant 0 : index
    %4 = vector.load %arg3[%c0_2, %c0_3, %c0_4] : memref<1x1x32xf32, #tpu.memory_space<vmem>>, vector<1x1x32xf32>
    %5 = vector.shape_cast %4 : vector<1x1x32xf32> to vector<1x32xf32>
    %c0_5 = arith.constant 0 : index
    %c0_6 = arith.constant 0 : index
    %c0_7 = arith.constant 0 : index
    %6 = vector.load %arg4[%c0_5, %c0_6, %c0_7] : memref<1x1x32xf32, #tpu.memory_space<vmem>>, vector<1x1x32xf32>
    %7 = vector.shape_cast %6 : vector<1x1x32xf32> to vector<1x32xf32>
    %cst = arith.constant dense<0.000000e+00> : vector<16xf32>
    %8 = vector.multi_reduction <add>, %3, %cst [1] : vector<16x32xf32> to vector<16xf32>
    %9 = vector.shape_cast %8 : vector<16xf32> to vector<16x1xf32>
    %cst_8 = arith.constant 3.200000e+01 : f32
    %10 = vector.broadcast %cst_8 : f32 to vector<16x1xf32>
    %11 = arith.divf %9, %10 : vector<16x1xf32>
    %12 = vector.broadcast %11 : vector<16x1xf32> to vector<16x32xf32>
    %13 = arith.subf %3, %12 : vector<16x32xf32>
    %14 = arith.mulf %13, %13 : vector<16x32xf32>
    %cst_9 = arith.constant dense<0.000000e+00> : vector<16xf32>
    %15 = vector.multi_reduction <add>, %14, %cst_9 [1] : vector<16x32xf32> to vector<16xf32>
    %16 = vector.shape_cast %15 : vector<16xf32> to vector<16x1xf32>
    %cst_10 = arith.constant 3.200000e+01 : f32
    %17 = vector.broadcast %cst_10 : f32 to vector<16x1xf32>
    %18 = arith.divf %16, %17 : vector<16x1xf32>
    %19 = vector.broadcast %11 : vector<16x1xf32> to vector<16x32xf32>
    %20 = arith.subf %3, %19 : vector<16x32xf32>
    %cst_11 = arith.constant 9.99999974E-6 : f32
    %21 = vector.broadcast %cst_11 : f32 to vector<16x1xf32>
    %22 = arith.addf %18, %21 : vector<16x1xf32>
    %23 = math.rsqrt %22 : vector<16x1xf32>
    %24 = vector.broadcast %23 : vector<16x1xf32> to vector<16x32xf32>
    %25 = arith.mulf %20, %24 : vector<16x32xf32>
    %26 = vector.broadcast %5 : vector<1x32xf32> to vector<16x32xf32>
    %27 = arith.mulf %25, %26 : vector<16x32xf32>
    %28 = vector.broadcast %7 : vector<1x32xf32> to vector<16x32xf32>
    %29 = arith.addf %27, %28 : vector<16x32xf32>
    %30 = arith.truncf %29 : vector<16x32xf32> to vector<16x32xbf16>
    %c0_12 = arith.constant 0 : index
    %c0_13 = arith.constant 0 : index
    %31 = vector.load %arg2[%c0_12, %c0_13] : memref<8x8xf32, #tpu.memory_space<vmem>>, vector<8x8xf32>
    %c0_14 = arith.constant 0 : index
    %c0_15 = arith.constant 0 : index
    %c0_16 = arith.constant 0 : index
    %c0_17 = arith.constant 0 : index
    %32 = vector.load %arg5[%c0_14, %c0_15, %c0_16, %c0_17] : memref<1x4x32x8xf32, #tpu.memory_space<vmem>>, vector<1x4x32x8xf32>
    %33 = vector.shape_cast %32 : vector<1x4x32x8xf32> to vector<4x32x8xf32>
    %34 = arith.truncf %33 : vector<4x32x8xf32> to vector<4x32x8xbf16>
    %c0_18 = arith.constant 0 : index
    %c0_19 = arith.constant 0 : index
    %c0_20 = arith.constant 0 : index
    %c0_21 = arith.constant 0 : index
    %35 = vector.load %arg6[%c0_18, %c0_19, %c0_20, %c0_21] : memref<1x4x32x8xf32, #tpu.memory_space<vmem>>, vector<1x4x32x8xf32>
    %36 = vector.shape_cast %35 : vector<1x4x32x8xf32> to vector<4x32x8xf32>
    %37 = arith.truncf %36 : vector<4x32x8xf32> to vector<4x32x8xbf16>
    %c0_22 = arith.constant 0 : index
    %c0_23 = arith.constant 0 : index
    %c0_24 = arith.constant 0 : index
    %c0_25 = arith.constant 0 : index
    %38 = vector.load %arg7[%c0_22, %c0_23, %c0_24, %c0_25] : memref<1x4x32x8xf32, #tpu.memory_space<vmem>>, vector<1x4x32x8xf32>
    %39 = vector.shape_cast %38 : vector<1x4x32x8xf32> to vector<4x32x8xf32>
    %40 = arith.truncf %39 : vector<4x32x8xf32> to vector<4x32x8xbf16>
    %c0_26 = arith.constant 0 : index
    %c0_27 = arith.constant 0 : index
    %c0_28 = arith.constant 0 : index
    %c0_29 = arith.constant 0 : index
    %41 = vector.load %arg8[%c0_26, %c0_27, %c0_28, %c0_29] : memref<1x4x8x32xf32, #tpu.memory_space<vmem>>, vector<1x4x8x32xf32>
    %42 = vector.shape_cast %41 : vector<1x4x8x32xf32> to vector<4x8x32xf32>
    %43 = arith.truncf %42 : vector<4x8x32xf32> to vector<4x8x32xbf16>
    %cst_30 = arith.constant 8.000000e+00 : f32
    %cst_31 = arith.constant -5.000000e-01 : f32
    %44 = math.powf %cst_30, %cst_31 : f32
    %cst_32 = arith.constant 0.000000e+00 : f32
    %45 = vector.broadcast %cst_32 : f32 to vector<16x32xf32>
    %c0_33 = arith.constant 0 : index
    %c0_34 = arith.constant 0 : index
    %c0_35 = arith.constant 0 : index
    %46 = vector.load %arg9[%c0_33, %c0_34, %c0_35] : memref<1x1x32xf32, #tpu.memory_space<vmem>>, vector<1x1x32xf32>
    %47 = vector.shape_cast %46 : vector<1x1x32xf32> to vector<1x32xf32>
    %48 = vector.broadcast %47 : vector<1x32xf32> to vector<16x32xf32>
    %49 = arith.addf %45, %48 : vector<16x32xf32>
    %50 = vector.extract_strided_slice %34 {offsets = [0, 0, 0], sizes = [1, 32, 8], strides = [1, 1, 1]} : vector<4x32x8xbf16> to vector<1x32x8xbf16>
    %51 = vector.shape_cast %50 : vector<1x32x8xbf16> to vector<32x8xbf16>
    %cst_36 = arith.constant dense<0.000000e+00> : vector<16x8xf32>
    %52 = tpu.matmul %30, %51, %cst_36 {dimension_numbers = #tpu.dot_dimension_numbers<[1], [0], [0], [1], [0, 0, 1, 1], [], []>} : vector<16x32xbf16>, vector<32x8xbf16>, vector<16x8xf32> -> vector<16x8xf32>
    %53 = vector.shape_cast %52 : vector<16x8xf32> to vector<2x8x8xf32>
    %54 = vector.extract_strided_slice %37 {offsets = [0, 0, 0], sizes = [1, 32, 8], strides = [1, 1, 1]} : vector<4x32x8xbf16> to vector<1x32x8xbf16>
    %55 = vector.shape_cast %54 : vector<1x32x8xbf16> to vector<32x8xbf16>
    %cst_37 = arith.constant dense<0.000000e+00> : vector<16x8xf32>
    %56 = tpu.matmul %30, %55, %cst_37 {dimension_numbers = #tpu.dot_dimension_numbers<[1], [0], [0], [1], [0, 0, 1, 1], [], []>} : vector<16x32xbf16>, vector<32x8xbf16>, vector<16x8xf32> -> vector<16x8xf32>
    %57 = vector.shape_cast %56 : vector<16x8xf32> to vector<2x8x8xf32>
    %58 = vector.extract_strided_slice %40 {offsets = [0, 0, 0], sizes = [1, 32, 8], strides = [1, 1, 1]} : vector<4x32x8xbf16> to vector<1x32x8xbf16>
    %59 = vector.shape_cast %58 : vector<1x32x8xbf16> to vector<32x8xbf16>
    %cst_38 = arith.constant dense<0.000000e+00> : vector<16x8xf32>
    %60 = tpu.matmul %30, %59, %cst_38 {dimension_numbers = #tpu.dot_dimension_numbers<[1], [0], [0], [1], [0, 0, 1, 1], [], []>} : vector<16x32xbf16>, vector<32x8xbf16>, vector<16x8xf32> -> vector<16x8xf32>
    %61 = vector.shape_cast %60 : vector<16x8xf32> to vector<2x8x8xf32>
    %62 = arith.truncf %53 : vector<2x8x8xf32> to vector<2x8x8xbf16>
    %63 = arith.truncf %57 : vector<2x8x8xf32> to vector<2x8x8xbf16>
    "tpu.trace_start"() <{level = 10 : i32, message = "bqd,bkd->bqk"}> : () -> ()
    %cst_39 = arith.constant dense<0.000000e+00> : vector<2x8x8xf32>
    %64 = tpu.matmul %62, %63, %cst_39 {dimension_numbers = #tpu.dot_dimension_numbers<[2], [2], [1], [1], [0, 0, 0, 1, 1, 1], [0], [0]>} : vector<2x8x8xbf16>, vector<2x8x8xbf16>, vector<2x8x8xf32> -> vector<2x8x8xf32>
    "tpu.trace_stop"() : () -> ()
    %65 = vector.broadcast %44 : f32 to vector<2x8x8xf32>
    %66 = arith.mulf %64, %65 : vector<2x8x8xf32>
    %67 = vector.shape_cast %31 : vector<8x8xf32> to vector<1x8x8xf32>
    %68 = vector.broadcast %67 : vector<1x8x8xf32> to vector<2x8x8xf32>
    %69 = arith.addf %66, %68 : vector<2x8x8xf32>
    %cst_40 = arith.constant dense<0xFF800000> : vector<2x8xf32>
    %70 = vector.multi_reduction <maximumf>, %69, %cst_40 [2] : vector<2x8x8xf32> to vector<2x8xf32>
    %71 = vector.shape_cast %70 : vector<2x8xf32> to vector<2x8x1xf32>
    %72 = vector.broadcast %71 : vector<2x8x1xf32> to vector<2x8x8xf32>
    %73 = arith.subf %69, %72 : vector<2x8x8xf32>
    %74 = math.exp %73 : vector<2x8x8xf32>
    %cst_41 = arith.constant dense<0.000000e+00> : vector<2x8xf32>
    %75 = vector.multi_reduction <add>, %74, %cst_41 [2] : vector<2x8x8xf32> to vector<2x8xf32>
    %76 = vector.shape_cast %75 : vector<2x8xf32> to vector<2x8x1xf32>
    %77 = tpu.reciprocal %76 {approx = true} : vector<2x8x1xf32> -> vector<2x8x1xf32>
    %78 = vector.broadcast %77 : vector<2x8x1xf32> to vector<2x8x8xf32>
    %79 = arith.mulf %74, %78 : vector<2x8x8xf32>
    %80 = arith.truncf %79 : vector<2x8x8xf32> to vector<2x8x8xbf16>
    %81 = arith.truncf %61 : vector<2x8x8xf32> to vector<2x8x8xbf16>
    "tpu.trace_start"() <{level = 10 : i32, message = "bqk,bkd->bqd"}> : () -> ()
    %cst_42 = arith.constant dense<0.000000e+00> : vector<2x8x8xf32>
    %82 = tpu.matmul %80, %81, %cst_42 {dimension_numbers = #tpu.dot_dimension_numbers<[2], [1], [1], [2], [0, 0, 0, 1, 1, 2], [0], [0]>} : vector<2x8x8xbf16>, vector<2x8x8xbf16>, vector<2x8x8xf32> -> vector<2x8x8xf32>
    "tpu.trace_stop"() : () -> ()
    %83 = vector.shape_cast %82 : vector<2x8x8xf32> to vector<16x8xf32>
    %84 = arith.truncf %83 : vector<16x8xf32> to vector<16x8xbf16>
    %85 = vector.extract_strided_slice %43 {offsets = [0, 0, 0], sizes = [1, 8, 32], strides = [1, 1, 1]} : vector<4x8x32xbf16> to vector<1x8x32xbf16>
    %86 = vector.shape_cast %85 : vector<1x8x32xbf16> to vector<8x32xbf16>
    %cst_43 = arith.constant dense<0.000000e+00> : vector<16x32xf32>
    %87 = tpu.matmul %84, %86, %cst_43 {dimension_numbers = #tpu.dot_dimension_numbers<[1], [0], [0], [1], [0, 0, 1, 1], [], []>} : vector<16x8xbf16>, vector<8x32xbf16>, vector<16x32xf32> -> vector<16x32xf32>
    %88 = arith.addf %49, %87 : vector<16x32xf32>
    %89 = vector.extract_strided_slice %34 {offsets = [1, 0, 0], sizes = [1, 32, 8], strides = [1, 1, 1]} : vector<4x32x8xbf16> to vector<1x32x8xbf16>
    %90 = vector.shape_cast %89 : vector<1x32x8xbf16> to vector<32x8xbf16>
    %cst_44 = arith.constant dense<0.000000e+00> : vector<16x8xf32>
    %91 = tpu.matmul %30, %90, %cst_44 {dimension_numbers = #tpu.dot_dimension_numbers<[1], [0], [0], [1], [0, 0, 1, 1], [], []>} : vector<16x32xbf16>, vector<32x8xbf16>, vector<16x8xf32> -> vector<16x8xf32>
    %92 = vector.shape_cast %91 : vector<16x8xf32> to vector<2x8x8xf32>
    %93 = vector.extract_strided_slice %37 {offsets = [1, 0, 0], sizes = [1, 32, 8], strides = [1, 1, 1]} : vector<4x32x8xbf16> to vector<1x32x8xbf16>
    %94 = vector.shape_cast %93 : vector<1x32x8xbf16> to vector<32x8xbf16>
    %cst_45 = arith.constant dense<0.000000e+00> : vector<16x8xf32>
    %95 = tpu.matmul %30, %94, %cst_45 {dimension_numbers = #tpu.dot_dimension_numbers<[1], [0], [0], [1], [0, 0, 1, 1], [], []>} : vector<16x32xbf16>, vector<32x8xbf16>, vector<16x8xf32> -> vector<16x8xf32>
    %96 = vector.shape_cast %95 : vector<16x8xf32> to vector<2x8x8xf32>
    %97 = vector.extract_strided_slice %40 {offsets = [1, 0, 0], sizes = [1, 32, 8], strides = [1, 1, 1]} : vector<4x32x8xbf16> to vector<1x32x8xbf16>
    %98 = vector.shape_cast %97 : vector<1x32x8xbf16> to vector<32x8xbf16>
    %cst_46 = arith.constant dense<0.000000e+00> : vector<16x8xf32>
    %99 = tpu.matmul %30, %98, %cst_46 {dimension_numbers = #tpu.dot_dimension_numbers<[1], [0], [0], [1], [0, 0, 1, 1], [], []>} : vector<16x32xbf16>, vector<32x8xbf16>, vector<16x8xf32> -> vector<16x8xf32>
    %100 = vector.shape_cast %99 : vector<16x8xf32> to vector<2x8x8xf32>
    %101 = arith.truncf %92 : vector<2x8x8xf32> to vector<2x8x8xbf16>
    %102 = arith.truncf %96 : vector<2x8x8xf32> to vector<2x8x8xbf16>
    "tpu.trace_start"() <{level = 10 : i32, message = "bqd,bkd->bqk"}> : () -> ()
    %cst_47 = arith.constant dense<0.000000e+00> : vector<2x8x8xf32>
    %103 = tpu.matmul %101, %102, %cst_47 {dimension_numbers = #tpu.dot_dimension_numbers<[2], [2], [1], [1], [0, 0, 0, 1, 1, 1], [0], [0]>} : vector<2x8x8xbf16>, vector<2x8x8xbf16>, vector<2x8x8xf32> -> vector<2x8x8xf32>
    "tpu.trace_stop"() : () -> ()
    %104 = vector.broadcast %44 : f32 to vector<2x8x8xf32>
    %105 = arith.mulf %103, %104 : vector<2x8x8xf32>
    %106 = vector.shape_cast %31 : vector<8x8xf32> to vector<1x8x8xf32>
    %107 = vector.broadcast %106 : vector<1x8x8xf32> to vector<2x8x8xf32>
    %108 = arith.addf %105, %107 : vector<2x8x8xf32>
    %cst_48 = arith.constant dense<0xFF800000> : vector<2x8xf32>
    %109 = vector.multi_reduction <maximumf>, %108, %cst_48 [2] : vector<2x8x8xf32> to vector<2x8xf32>
    %110 = vector.shape_cast %109 : vector<2x8xf32> to vector<2x8x1xf32>
    %111 = vector.broadcast %110 : vector<2x8x1xf32> to vector<2x8x8xf32>
    %112 = arith.subf %108, %111 : vector<2x8x8xf32>
    %113 = math.exp %112 : vector<2x8x8xf32>
    %cst_49 = arith.constant dense<0.000000e+00> : vector<2x8xf32>
    %114 = vector.multi_reduction <add>, %113, %cst_49 [2] : vector<2x8x8xf32> to vector<2x8xf32>
    %115 = vector.shape_cast %114 : vector<2x8xf32> to vector<2x8x1xf32>
    %116 = tpu.reciprocal %115 {approx = true} : vector<2x8x1xf32> -> vector<2x8x1xf32>
    %117 = vector.broadcast %116 : vector<2x8x1xf32> to vector<2x8x8xf32>
    %118 = arith.mulf %113, %117 : vector<2x8x8xf32>
    %119 = arith.truncf %118 : vector<2x8x8xf32> to vector<2x8x8xbf16>
    %120 = arith.truncf %100 : vector<2x8x8xf32> to vector<2x8x8xbf16>
    "tpu.trace_start"() <{level = 10 : i32, message = "bqk,bkd->bqd"}> : () -> ()
    %cst_50 = arith.constant dense<0.000000e+00> : vector<2x8x8xf32>
    %121 = tpu.matmul %119, %120, %cst_50 {dimension_numbers = #tpu.dot_dimension_numbers<[2], [1], [1], [2], [0, 0, 0, 1, 1, 2], [0], [0]>} : vector<2x8x8xbf16>, vector<2x8x8xbf16>, vector<2x8x8xf32> -> vector<2x8x8xf32>
    "tpu.trace_stop"() : () -> ()
    %122 = vector.shape_cast %121 : vector<2x8x8xf32> to vector<16x8xf32>
    %123 = arith.truncf %122 : vector<16x8xf32> to vector<16x8xbf16>
    %124 = vector.extract_strided_slice %43 {offsets = [1, 0, 0], sizes = [1, 8, 32], strides = [1, 1, 1]} : vector<4x8x32xbf16> to vector<1x8x32xbf16>
    %125 = vector.shape_cast %124 : vector<1x8x32xbf16> to vector<8x32xbf16>
    %cst_51 = arith.constant dense<0.000000e+00> : vector<16x32xf32>
    %126 = tpu.matmul %123, %125, %cst_51 {dimension_numbers = #tpu.dot_dimension_numbers<[1], [0], [0], [1], [0, 0, 1, 1], [], []>} : vector<16x8xbf16>, vector<8x32xbf16>, vector<16x32xf32> -> vector<16x32xf32>
    %127 = arith.addf %88, %126 : vector<16x32xf32>
    %128 = vector.extract_strided_slice %34 {offsets = [2, 0, 0], sizes = [1, 32, 8], strides = [1, 1, 1]} : vector<4x32x8xbf16> to vector<1x32x8xbf16>
    %129 = vector.shape_cast %128 : vector<1x32x8xbf16> to vector<32x8xbf16>
    %cst_52 = arith.constant dense<0.000000e+00> : vector<16x8xf32>
    %130 = tpu.matmul %30, %129, %cst_52 {dimension_numbers = #tpu.dot_dimension_numbers<[1], [0], [0], [1], [0, 0, 1, 1], [], []>} : vector<16x32xbf16>, vector<32x8xbf16>, vector<16x8xf32> -> vector<16x8xf32>
    %131 = vector.shape_cast %130 : vector<16x8xf32> to vector<2x8x8xf32>
    %132 = vector.extract_strided_slice %37 {offsets = [2, 0, 0], sizes = [1, 32, 8], strides = [1, 1, 1]} : vector<4x32x8xbf16> to vector<1x32x8xbf16>
    %133 = vector.shape_cast %132 : vector<1x32x8xbf16> to vector<32x8xbf16>
    %cst_53 = arith.constant dense<0.000000e+00> : vector<16x8xf32>
    %134 = tpu.matmul %30, %133, %cst_53 {dimension_numbers = #tpu.dot_dimension_numbers<[1], [0], [0], [1], [0, 0, 1, 1], [], []>} : vector<16x32xbf16>, vector<32x8xbf16>, vector<16x8xf32> -> vector<16x8xf32>
    %135 = vector.shape_cast %134 : vector<16x8xf32> to vector<2x8x8xf32>
    %136 = vector.extract_strided_slice %40 {offsets = [2, 0, 0], sizes = [1, 32, 8], strides = [1, 1, 1]} : vector<4x32x8xbf16> to vector<1x32x8xbf16>
    %137 = vector.shape_cast %136 : vector<1x32x8xbf16> to vector<32x8xbf16>
    %cst_54 = arith.constant dense<0.000000e+00> : vector<16x8xf32>
    %138 = tpu.matmul %30, %137, %cst_54 {dimension_numbers = #tpu.dot_dimension_numbers<[1], [0], [0], [1], [0, 0, 1, 1], [], []>} : vector<16x32xbf16>, vector<32x8xbf16>, vector<16x8xf32> -> vector<16x8xf32>
    %139 = vector.shape_cast %138 : vector<16x8xf32> to vector<2x8x8xf32>
    %140 = arith.truncf %131 : vector<2x8x8xf32> to vector<2x8x8xbf16>
    %141 = arith.truncf %135 : vector<2x8x8xf32> to vector<2x8x8xbf16>
    "tpu.trace_start"() <{level = 10 : i32, message = "bqd,bkd->bqk"}> : () -> ()
    %cst_55 = arith.constant dense<0.000000e+00> : vector<2x8x8xf32>
    %142 = tpu.matmul %140, %141, %cst_55 {dimension_numbers = #tpu.dot_dimension_numbers<[2], [2], [1], [1], [0, 0, 0, 1, 1, 1], [0], [0]>} : vector<2x8x8xbf16>, vector<2x8x8xbf16>, vector<2x8x8xf32> -> vector<2x8x8xf32>
    "tpu.trace_stop"() : () -> ()
    %143 = vector.broadcast %44 : f32 to vector<2x8x8xf32>
    %144 = arith.mulf %142, %143 : vector<2x8x8xf32>
    %145 = vector.shape_cast %31 : vector<8x8xf32> to vector<1x8x8xf32>
    %146 = vector.broadcast %145 : vector<1x8x8xf32> to vector<2x8x8xf32>
    %147 = arith.addf %144, %146 : vector<2x8x8xf32>
    %cst_56 = arith.constant dense<0xFF800000> : vector<2x8xf32>
    %148 = vector.multi_reduction <maximumf>, %147, %cst_56 [2] : vector<2x8x8xf32> to vector<2x8xf32>
    %149 = vector.shape_cast %148 : vector<2x8xf32> to vector<2x8x1xf32>
    %150 = vector.broadcast %149 : vector<2x8x1xf32> to vector<2x8x8xf32>
    %151 = arith.subf %147, %150 : vector<2x8x8xf32>
    %152 = math.exp %151 : vector<2x8x8xf32>
    %cst_57 = arith.constant dense<0.000000e+00> : vector<2x8xf32>
    %153 = vector.multi_reduction <add>, %152, %cst_57 [2] : vector<2x8x8xf32> to vector<2x8xf32>
    %154 = vector.shape_cast %153 : vector<2x8xf32> to vector<2x8x1xf32>
    %155 = tpu.reciprocal %154 {approx = true} : vector<2x8x1xf32> -> vector<2x8x1xf32>
    %156 = vector.broadcast %155 : vector<2x8x1xf32> to vector<2x8x8xf32>
    %157 = arith.mulf %152, %156 : vector<2x8x8xf32>
    %158 = arith.truncf %157 : vector<2x8x8xf32> to vector<2x8x8xbf16>
    %159 = arith.truncf %139 : vector<2x8x8xf32> to vector<2x8x8xbf16>
    "tpu.trace_start"() <{level = 10 : i32, message = "bqk,bkd->bqd"}> : () -> ()
    %cst_58 = arith.constant dense<0.000000e+00> : vector<2x8x8xf32>
    %160 = tpu.matmul %158, %159, %cst_58 {dimension_numbers = #tpu.dot_dimension_numbers<[2], [1], [1], [2], [0, 0, 0, 1, 1, 2], [0], [0]>} : vector<2x8x8xbf16>, vector<2x8x8xbf16>, vector<2x8x8xf32> -> vector<2x8x8xf32>
    "tpu.trace_stop"() : () -> ()
    %161 = vector.shape_cast %160 : vector<2x8x8xf32> to vector<16x8xf32>
    %162 = arith.truncf %161 : vector<16x8xf32> to vector<16x8xbf16>
    %163 = vector.extract_strided_slice %43 {offsets = [2, 0, 0], sizes = [1, 8, 32], strides = [1, 1, 1]} : vector<4x8x32xbf16> to vector<1x8x32xbf16>
    %164 = vector.shape_cast %163 : vector<1x8x32xbf16> to vector<8x32xbf16>
    %cst_59 = arith.constant dense<0.000000e+00> : vector<16x32xf32>
    %165 = tpu.matmul %162, %164, %cst_59 {dimension_numbers = #tpu.dot_dimension_numbers<[1], [0], [0], [1], [0, 0, 1, 1], [], []>} : vector<16x8xbf16>, vector<8x32xbf16>, vector<16x32xf32> -> vector<16x32xf32>
    %166 = arith.addf %127, %165 : vector<16x32xf32>
    %167 = vector.extract_strided_slice %34 {offsets = [3, 0, 0], sizes = [1, 32, 8], strides = [1, 1, 1]} : vector<4x32x8xbf16> to vector<1x32x8xbf16>
    %168 = vector.shape_cast %167 : vector<1x32x8xbf16> to vector<32x8xbf16>
    %cst_60 = arith.constant dense<0.000000e+00> : vector<16x8xf32>
    %169 = tpu.matmul %30, %168, %cst_60 {dimension_numbers = #tpu.dot_dimension_numbers<[1], [0], [0], [1], [0, 0, 1, 1], [], []>} : vector<16x32xbf16>, vector<32x8xbf16>, vector<16x8xf32> -> vector<16x8xf32>
    %170 = vector.shape_cast %169 : vector<16x8xf32> to vector<2x8x8xf32>
    %171 = vector.extract_strided_slice %37 {offsets = [3, 0, 0], sizes = [1, 32, 8], strides = [1, 1, 1]} : vector<4x32x8xbf16> to vector<1x32x8xbf16>
    %172 = vector.shape_cast %171 : vector<1x32x8xbf16> to vector<32x8xbf16>
    %cst_61 = arith.constant dense<0.000000e+00> : vector<16x8xf32>
    %173 = tpu.matmul %30, %172, %cst_61 {dimension_numbers = #tpu.dot_dimension_numbers<[1], [0], [0], [1], [0, 0, 1, 1], [], []>} : vector<16x32xbf16>, vector<32x8xbf16>, vector<16x8xf32> -> vector<16x8xf32>
    %174 = vector.shape_cast %173 : vector<16x8xf32> to vector<2x8x8xf32>
    %175 = vector.extract_strided_slice %40 {offsets = [3, 0, 0], sizes = [1, 32, 8], strides = [1, 1, 1]} : vector<4x32x8xbf16> to vector<1x32x8xbf16>
    %176 = vector.shape_cast %175 : vector<1x32x8xbf16> to vector<32x8xbf16>
    %cst_62 = arith.constant dense<0.000000e+00> : vector<16x8xf32>
    %177 = tpu.matmul %30, %176, %cst_62 {dimension_numbers = #tpu.dot_dimension_numbers<[1], [0], [0], [1], [0, 0, 1, 1], [], []>} : vector<16x32xbf16>, vector<32x8xbf16>, vector<16x8xf32> -> vector<16x8xf32>
    %178 = vector.shape_cast %177 : vector<16x8xf32> to vector<2x8x8xf32>
    %179 = arith.truncf %170 : vector<2x8x8xf32> to vector<2x8x8xbf16>
    %180 = arith.truncf %174 : vector<2x8x8xf32> to vector<2x8x8xbf16>
    "tpu.trace_start"() <{level = 10 : i32, message = "bqd,bkd->bqk"}> : () -> ()
    %cst_63 = arith.constant dense<0.000000e+00> : vector<2x8x8xf32>
    %181 = tpu.matmul %179, %180, %cst_63 {dimension_numbers = #tpu.dot_dimension_numbers<[2], [2], [1], [1], [0, 0, 0, 1, 1, 1], [0], [0]>} : vector<2x8x8xbf16>, vector<2x8x8xbf16>, vector<2x8x8xf32> -> vector<2x8x8xf32>
    "tpu.trace_stop"() : () -> ()
    %182 = vector.broadcast %44 : f32 to vector<2x8x8xf32>
    %183 = arith.mulf %181, %182 : vector<2x8x8xf32>
    %184 = vector.shape_cast %31 : vector<8x8xf32> to vector<1x8x8xf32>
    %185 = vector.broadcast %184 : vector<1x8x8xf32> to vector<2x8x8xf32>
    %186 = arith.addf %183, %185 : vector<2x8x8xf32>
    %cst_64 = arith.constant dense<0xFF800000> : vector<2x8xf32>
    %187 = vector.multi_reduction <maximumf>, %186, %cst_64 [2] : vector<2x8x8xf32> to vector<2x8xf32>
    %188 = vector.shape_cast %187 : vector<2x8xf32> to vector<2x8x1xf32>
    %189 = vector.broadcast %188 : vector<2x8x1xf32> to vector<2x8x8xf32>
    %190 = arith.subf %186, %189 : vector<2x8x8xf32>
    %191 = math.exp %190 : vector<2x8x8xf32>
    %cst_65 = arith.constant dense<0.000000e+00> : vector<2x8xf32>
    %192 = vector.multi_reduction <add>, %191, %cst_65 [2] : vector<2x8x8xf32> to vector<2x8xf32>
    %193 = vector.shape_cast %192 : vector<2x8xf32> to vector<2x8x1xf32>
    %194 = tpu.reciprocal %193 {approx = true} : vector<2x8x1xf32> -> vector<2x8x1xf32>
    %195 = vector.broadcast %194 : vector<2x8x1xf32> to vector<2x8x8xf32>
    %196 = arith.mulf %191, %195 : vector<2x8x8xf32>
    %197 = arith.truncf %196 : vector<2x8x8xf32> to vector<2x8x8xbf16>
    %198 = arith.truncf %178 : vector<2x8x8xf32> to vector<2x8x8xbf16>
    "tpu.trace_start"() <{level = 10 : i32, message = "bqk,bkd->bqd"}> : () -> ()
    %cst_66 = arith.constant dense<0.000000e+00> : vector<2x8x8xf32>
    %199 = tpu.matmul %197, %198, %cst_66 {dimension_numbers = #tpu.dot_dimension_numbers<[2], [1], [1], [2], [0, 0, 0, 1, 1, 2], [0], [0]>} : vector<2x8x8xbf16>, vector<2x8x8xbf16>, vector<2x8x8xf32> -> vector<2x8x8xf32>
    "tpu.trace_stop"() : () -> ()
    %200 = vector.shape_cast %199 : vector<2x8x8xf32> to vector<16x8xf32>
    %201 = arith.truncf %200 : vector<16x8xf32> to vector<16x8xbf16>
    %202 = vector.extract_strided_slice %43 {offsets = [3, 0, 0], sizes = [1, 8, 32], strides = [1, 1, 1]} : vector<4x8x32xbf16> to vector<1x8x32xbf16>
    %203 = vector.shape_cast %202 : vector<1x8x32xbf16> to vector<8x32xbf16>
    %cst_67 = arith.constant dense<0.000000e+00> : vector<16x32xf32>
    %204 = tpu.matmul %201, %203, %cst_67 {dimension_numbers = #tpu.dot_dimension_numbers<[1], [0], [0], [1], [0, 0, 1, 1], [], []>} : vector<16x8xbf16>, vector<8x32xbf16>, vector<16x32xf32> -> vector<16x32xf32>
    %205 = arith.addf %166, %204 : vector<16x32xf32>
    %206 = arith.addf %3, %205 : vector<16x32xf32>
    %c0_68 = arith.constant 0 : index
    %c0_69 = arith.constant 0 : index
    %c0_70 = arith.constant 0 : index
    %207 = vector.load %arg10[%c0_68, %c0_69, %c0_70] : memref<1x1x32xf32, #tpu.memory_space<vmem>>, vector<1x1x32xf32>
    %208 = vector.shape_cast %207 : vector<1x1x32xf32> to vector<1x32xf32>
    %c0_71 = arith.constant 0 : index
    %c0_72 = arith.constant 0 : index
    %c0_73 = arith.constant 0 : index
    %209 = vector.load %arg11[%c0_71, %c0_72, %c0_73] : memref<1x1x32xf32, #tpu.memory_space<vmem>>, vector<1x1x32xf32>
    %210 = vector.shape_cast %209 : vector<1x1x32xf32> to vector<1x32xf32>
    %cst_74 = arith.constant dense<0.000000e+00> : vector<16xf32>
    %211 = vector.multi_reduction <add>, %206, %cst_74 [1] : vector<16x32xf32> to vector<16xf32>
    %212 = vector.shape_cast %211 : vector<16xf32> to vector<16x1xf32>
    %cst_75 = arith.constant 3.200000e+01 : f32
    %213 = vector.broadcast %cst_75 : f32 to vector<16x1xf32>
    %214 = arith.divf %212, %213 : vector<16x1xf32>
    %215 = vector.broadcast %214 : vector<16x1xf32> to vector<16x32xf32>
    %216 = arith.subf %206, %215 : vector<16x32xf32>
    %217 = arith.mulf %216, %216 : vector<16x32xf32>
    %cst_76 = arith.constant dense<0.000000e+00> : vector<16xf32>
    %218 = vector.multi_reduction <add>, %217, %cst_76 [1] : vector<16x32xf32> to vector<16xf32>
    %219 = vector.shape_cast %218 : vector<16xf32> to vector<16x1xf32>
    %cst_77 = arith.constant 3.200000e+01 : f32
    %220 = vector.broadcast %cst_77 : f32 to vector<16x1xf32>
    %221 = arith.divf %219, %220 : vector<16x1xf32>
    %222 = vector.broadcast %214 : vector<16x1xf32> to vector<16x32xf32>
    %223 = arith.subf %206, %222 : vector<16x32xf32>
    %cst_78 = arith.constant 9.99999974E-6 : f32
    %224 = vector.broadcast %cst_78 : f32 to vector<16x1xf32>
    %225 = arith.addf %221, %224 : vector<16x1xf32>
    %226 = math.rsqrt %225 : vector<16x1xf32>
    %227 = vector.broadcast %226 : vector<16x1xf32> to vector<16x32xf32>
    %228 = arith.mulf %223, %227 : vector<16x32xf32>
    %229 = vector.broadcast %208 : vector<1x32xf32> to vector<16x32xf32>
    %230 = arith.mulf %228, %229 : vector<16x32xf32>
    %231 = vector.broadcast %210 : vector<1x32xf32> to vector<16x32xf32>
    %232 = arith.addf %230, %231 : vector<16x32xf32>
    %233 = arith.truncf %232 : vector<16x32xf32> to vector<16x32xbf16>
    %c0_79 = arith.constant 0 : index
    %c0_80 = arith.constant 0 : index
    %c0_81 = arith.constant 0 : index
    %234 = vector.load %arg12[%c0_79, %c0_80, %c0_81] : memref<1x32x128xf32, #tpu.memory_space<vmem>>, vector<1x32x128xf32>
    %235 = vector.shape_cast %234 : vector<1x32x128xf32> to vector<32x128xf32>
    %236 = arith.truncf %235 : vector<32x128xf32> to vector<32x128xbf16>
    %cst_82 = arith.constant dense<0.000000e+00> : vector<16x128xf32>
    %237 = tpu.matmul %233, %236, %cst_82 {dimension_numbers = #tpu.dot_dimension_numbers<[1], [0], [0], [1], [0, 0, 1, 1], [], []>} : vector<16x32xbf16>, vector<32x128xbf16>, vector<16x128xf32> -> vector<16x128xf32>
    %c0_83 = arith.constant 0 : index
    %c0_84 = arith.constant 0 : index
    %c0_85 = arith.constant 0 : index
    %238 = vector.load %arg13[%c0_83, %c0_84, %c0_85] : memref<1x1x128xf32, #tpu.memory_space<vmem>>, vector<1x1x128xf32>
    %239 = vector.shape_cast %238 : vector<1x1x128xf32> to vector<1x128xf32>
    %240 = vector.broadcast %239 : vector<1x128xf32> to vector<16x128xf32>
    %241 = arith.addf %237, %240 : vector<16x128xf32>
    %cst_86 = arith.constant 0.000000e+00 : f32
    %242 = vector.broadcast %cst_86 : f32 to vector<16x128xf32>
    %243 = arith.maximumf %241, %242 : vector<16x128xf32>
    %244 = arith.truncf %243 : vector<16x128xf32> to vector<16x128xbf16>
    %c0_87 = arith.constant 0 : index
    %c0_88 = arith.constant 0 : index
    %c0_89 = arith.constant 0 : index
    %245 = vector.load %arg14[%c0_87, %c0_88, %c0_89] : memref<1x128x32xf32, #tpu.memory_space<vmem>>, vector<1x128x32xf32>
    %246 = vector.shape_cast %245 : vector<1x128x32xf32> to vector<128x32xf32>
    %247 = arith.truncf %246 : vector<128x32xf32> to vector<128x32xbf16>
    %cst_90 = arith.constant dense<0.000000e+00> : vector<16x32xf32>
    %248 = tpu.matmul %244, %247, %cst_90 {dimension_numbers = #tpu.dot_dimension_numbers<[1], [0], [0], [1], [0, 0, 1, 1], [], []>} : vector<16x128xbf16>, vector<128x32xbf16>, vector<16x32xf32> -> vector<16x32xf32>
    %c0_91 = arith.constant 0 : index
    %c0_92 = arith.constant 0 : index
    %c0_93 = arith.constant 0 : index
    %249 = vector.load %arg15[%c0_91, %c0_92, %c0_93] : memref<1x1x32xf32, #tpu.memory_space<vmem>>, vector<1x1x32xf32>
    %250 = vector.shape_cast %249 : vector<1x1x32xf32> to vector<1x32xf32>
    %251 = vector.broadcast %250 : vector<1x32xf32> to vector<16x32xf32>
    %252 = arith.addf %248, %251 : vector<16x32xf32>
    %253 = arith.addf %206, %252 : vector<16x32xf32>
    %c0_94 = arith.constant 0 : index
    %c0_95 = arith.constant 0 : index
    %254 = vector.load %arg21[%c0_94, %c0_95] : memref<16x32xf32, #tpu.memory_space<vmem>>, vector<16x32xf32>
    tpu.vector_store %arg21[%c0_94, %c0_95], %253 {strides = array<i32>} : memref<16x32xf32, #tpu.memory_space<vmem>>, vector<16x32xf32>,
    %c1_i32 = arith.constant 1 : i32
    %255 = arith.cmpi eq, %arg0, %c1_i32 : i32
    %256 = arith.extui %255 : i1 to i32
    %c0_i32_96 = arith.constant 0 : i32
    %257 = arith.cmpi ne, %256, %c0_i32_96 : i32
    scf.if %257 {
      %c0_97 = arith.constant 0 : index
      %c0_98 = arith.constant 0 : index
      %258 = vector.load %arg16[%c0_97, %c0_98] : memref<1x32xf32, #tpu.memory_space<vmem>>, vector<1x32xf32>
      %c0_99 = arith.constant 0 : index
      %c0_100 = arith.constant 0 : index
      %259 = vector.load %arg17[%c0_99, %c0_100] : memref<1x32xf32, #tpu.memory_space<vmem>>, vector<1x32xf32>
      %cst_101 = arith.constant dense<0.000000e+00> : vector<16xf32>
      %260 = vector.multi_reduction <add>, %253, %cst_101 [1] : vector<16x32xf32> to vector<16xf32>
      %261 = vector.shape_cast %260 : vector<16xf32> to vector<16x1xf32>
      %cst_102 = arith.constant 3.200000e+01 : f32
      %262 = vector.broadcast %cst_102 : f32 to vector<16x1xf32>
      %263 = arith.divf %261, %262 : vector<16x1xf32>
      %264 = vector.broadcast %263 : vector<16x1xf32> to vector<16x32xf32>
      %265 = arith.subf %253, %264 : vector<16x32xf32>
      %266 = arith.mulf %265, %265 : vector<16x32xf32>
      %cst_103 = arith.constant dense<0.000000e+00> : vector<16xf32>
      %267 = vector.multi_reduction <add>, %266, %cst_103 [1] : vector<16x32xf32> to vector<16xf32>
      %268 = vector.shape_cast %267 : vector<16xf32> to vector<16x1xf32>
      %cst_104 = arith.constant 3.200000e+01 : f32
      %269 = vector.broadcast %cst_104 : f32 to vector<16x1xf32>
      %270 = arith.divf %268, %269 : vector<16x1xf32>
      %271 = vector.broadcast %263 : vector<16x1xf32> to vector<16x32xf32>
      %272 = arith.subf %253, %271 : vector<16x32xf32>
      %cst_105 = arith.constant 9.99999974E-6 : f32
      %273 = vector.broadcast %cst_105 : f32 to vector<16x1xf32>
      %274 = arith.addf %270, %273 : vector<16x1xf32>
      %275 = math.rsqrt %274 : vector<16x1xf32>
      %276 = vector.broadcast %275 : vector<16x1xf32> to vector<16x32xf32>
      %277 = arith.mulf %272, %276 : vector<16x32xf32>
      %278 = vector.broadcast %258 : vector<1x32xf32> to vector<16x32xf32>
      %279 = arith.mulf %277, %278 : vector<16x32xf32>
      %280 = vector.broadcast %259 : vector<1x32xf32> to vector<16x32xf32>
      %281 = arith.addf %279, %280 : vector<16x32xf32>
      %282 = arith.truncf %281 : vector<16x32xf32> to vector<16x32xbf16>
      %c0_106 = arith.constant 0 : index
      %c0_107 = arith.constant 0 : index
      %283 = vector.load %arg18[%c0_106, %c0_107] : memref<32x128xf32, #tpu.memory_space<vmem>>, vector<32x128xf32>
      %284 = arith.truncf %283 : vector<32x128xf32> to vector<32x128xbf16>
      %cst_108 = arith.constant dense<0.000000e+00> : vector<16x128xf32>
      %285 = tpu.matmul %282, %284, %cst_108 {dimension_numbers = #tpu.dot_dimension_numbers<[1], [0], [0], [1], [0, 0, 1, 1], [], []>} : vector<16x32xbf16>, vector<32x128xbf16>, vector<16x128xf32> -> vector<16x128xf32>
      %c0_109 = arith.constant 0 : index
      %c0_110 = arith.constant 0 : index
      %286 = vector.load %arg19[%c0_109, %c0_110] : memref<1x128xf32, #tpu.memory_space<vmem>>, vector<1x128xf32>
      %287 = vector.broadcast %286 : vector<1x128xf32> to vector<16x128xf32>
      %288 = arith.addf %285, %287 : vector<16x128xf32>
      %289 = vector.shape_cast %288 : vector<16x128xf32> to vector<2x8x128xf32>
      %c0_111 = arith.constant 0 : index
      %c0_112 = arith.constant 0 : index
      %c0_113 = arith.constant 0 : index
      %290 = vector.load %arg20[%c0_111, %c0_112, %c0_113] : memref<2x8x128xf32, #tpu.memory_space<vmem>>, vector<2x8x128xf32>
      tpu.vector_store %arg20[%c0_111, %c0_112, %c0_113], %289 {strides = array<i32>} : memref<2x8x128xf32, #tpu.memory_space<vmem>>, vector<2x8x128xf32>,
    } else {
    }
    return
  }
  func.func @transform_0(%arg0: i32) -> (i32, i32, i32) {
    %c0_i32 = arith.constant 0 : i32
    %c0_i32_0 = arith.constant 0 : i32
    %c0_i32_1 = arith.constant 0 : i32
    %c0_i32_2 = arith.constant 0 : i32
    return %c0_i32, %c0_i32_0, %c0_i32_1 : i32, i32, i32
  }
  func.func @transform_1(%arg0: i32) -> (i32, i32) {
    %c0_i32 = arith.constant 0 : i32
    %c0_i32_0 = arith.constant 0 : i32
    %c0_i32_1 = arith.constant 0 : i32
    return %c0_i32, %c0_i32_0 : i32, i32
  }
  func.func @transform_2(%arg0: i32) -> (i32, i32, i32) {
    %c0_i32 = arith.constant 0 : i32
    %c0_i32_0 = arith.constant 0 : i32
    %c0_i32_1 = arith.constant 0 : i32
    return %arg0, %c0_i32, %c0_i32_0 : i32, i32, i32
  }
  func.func @transform_3(%arg0: i32) -> (i32, i32, i32) {
    %c0_i32 = arith.constant 0 : i32
    %c0_i32_0 = arith.constant 0 : i32
    %c0_i32_1 = arith.constant 0 : i32
    return %arg0, %c0_i32, %c0_i32_0 : i32, i32, i32
  }
  func.func @transform_4(%arg0: i32) -> (i32, i32, i32, i32) {
    %c0_i32 = arith.constant 0 : i32
    %c0_i32_0 = arith.constant 0 : i32
    %c0_i32_1 = arith.constant 0 : i32
    %c0_i32_2 = arith.constant 0 : i32
    return %arg0, %c0_i32, %c0_i32_0, %c0_i32_1 : i32, i32, i32, i32
  }
  func.func @transform_5(%arg0: i32) -> (i32, i32, i32, i32) {
    %c0_i32 = arith.constant 0 : i32
    %c0_i32_0 = arith.constant 0 : i32
    %c0_i32_1 = arith.constant 0 : i32
    %c0_i32_2 = arith.constant 0 : i32
    return %arg0, %c0_i32, %c0_i32_0, %c0_i32_1 : i32, i32, i32, i32
  }
  func.func @transform_6(%arg0: i32) -> (i32, i32, i32, i32) {
    %c0_i32 = arith.constant 0 : i32
    %c0_i32_0 = arith.constant 0 : i32
    %c0_i32_1 = arith.constant 0 : i32
    %c0_i32_2 = arith.constant 0 : i32
    return %arg0, %c0_i32, %c0_i32_0, %c0_i32_1 : i32, i32, i32, i32
  }
  func.func @transform_7(%arg0: i32) -> (i32, i32, i32, i32) {
    %c0_i32 = arith.constant 0 : i32
    %c0_i32_0 = arith.constant 0 : i32
    %c0_i32_1 = arith.constant 0 : i32
    %c0_i32_2 = arith.constant 0 : i32
    return %arg0, %c0_i32, %c0_i32_0, %c0_i32_1 : i32, i32, i32, i32
  }
  func.func @transform_8(%arg0: i32) -> (i32, i32, i32) {
    %c0_i32 = arith.constant 0 : i32
    %c0_i32_0 = arith.constant 0 : i32
    %c0_i32_1 = arith.constant 0 : i32
    return %arg0, %c0_i32, %c0_i32_0 : i32, i32, i32
  }
  func.func @transform_9(%arg0: i32) -> (i32, i32, i32) {
    %c0_i32 = arith.constant 0 : i32
    %c0_i32_0 = arith.constant 0 : i32
    %c0_i32_1 = arith.constant 0 : i32
    return %arg0, %c0_i32, %c0_i32_0 : i32, i32, i32
  }
  func.func @transform_10(%arg0: i32) -> (i32, i32, i32) {
    %c0_i32 = arith.constant 0 : i32
    %c0_i32_0 = arith.constant 0 : i32
    %c0_i32_1 = arith.constant 0 : i32
    return %arg0, %c0_i32, %c0_i32_0 : i32, i32, i32
  }
  func.func @transform_11(%arg0: i32) -> (i32, i32, i32) {
    %c0_i32 = arith.constant 0 : i32
    %c0_i32_0 = arith.constant 0 : i32
    %c0_i32_1 = arith.constant 0 : i32
    return %arg0, %c0_i32, %c0_i32_0 : i32, i32, i32
  }
  func.func @transform_12(%arg0: i32) -> (i32, i32, i32) {
    %c0_i32 = arith.constant 0 : i32
    %c0_i32_0 = arith.constant 0 : i32
    %c0_i32_1 = arith.constant 0 : i32
    return %arg0, %c0_i32, %c0_i32_0 : i32, i32, i32
  }
  func.func @transform_13(%arg0: i32) -> (i32, i32, i32) {
    %c0_i32 = arith.constant 0 : i32
    %c0_i32_0 = arith.constant 0 : i32
    %c0_i32_1 = arith.constant 0 : i32
    return %arg0, %c0_i32, %c0_i32_0 : i32, i32, i32
  }
  func.func @transform_14(%arg0: i32) -> (i32, i32, i32) {
    %c0_i32 = arith.constant 0 : i32
    %c0_i32_0 = arith.constant 0 : i32
    %c0_i32_1 = arith.constant 0 : i32
    return %arg0, %c0_i32, %c0_i32_0 : i32, i32, i32
  }
  func.func @transform_15(%arg0: i32) -> (i32, i32) {
    %c0_i32 = arith.constant 0 : i32
    %c0_i32_0 = arith.constant 0 : i32
    %c0_i32_1 = arith.constant 0 : i32
    return %c0_i32, %c0_i32_0 : i32, i32
  }
  func.func @transform_16(%arg0: i32) -> (i32, i32) {
    %c0_i32 = arith.constant 0 : i32
    %c0_i32_0 = arith.constant 0 : i32
    %c0_i32_1 = arith.constant 0 : i32
    return %c0_i32, %c0_i32_0 : i32, i32
  }
  func.func @transform_17(%arg0: i32) -> (i32, i32) {
    %c0_i32 = arith.constant 0 : i32
    %c0_i32_0 = arith.constant 0 : i32
    %c0_i32_1 = arith.constant 0 : i32
    return %c0_i32, %c0_i32_0 : i32, i32
  }
  func.func @transform_18(%arg0: i32) -> (i32, i32) {
    %c0_i32 = arith.constant 0 : i32
    %c0_i32_0 = arith.constant 0 : i32
    %c0_i32_1 = arith.constant 0 : i32
    return %c0_i32, %c0_i32_0 : i32, i32
  }
  func.func @transform_19(%arg0: i32) -> (i32, i32, i32) {
    %c0_i32 = arith.constant 0 : i32
    %c0_i32_0 = arith.constant 0 : i32
    %c0_i32_1 = arith.constant 0 : i32
    %c0_i32_2 = arith.constant 0 : i32
    return %c0_i32, %c0_i32_0, %c0_i32_1 : i32, i32, i32
  }
}

</mosaic_0001>

<bundles_post_ra>
// kernel: tpu_custom_call.1
= control target key start
LH: loop header
LB: loop body
LE: loop exit
PB: predicated region body
PF: predicated region fallthrough
CT: control target
= control target key end

     0   :  { %s2877_s0 = inlined_call_operand.vmem [shape: f32[2,8,32], index: 0, kind: input, shape index: {}]   ;;  %s2878_s1 = inlined_call_operand.vmem [shape: f32[8,8], index: 1, kind: input, shape index: {}]   ;;  %s2879_s2 = inlined_call_operand.vmem [shape: f32[2,1,32], index: 2, kind: input, shape index: {}]   ;;  %s2880_s3 = inlined_call_operand.vmem [shape: f32[2,1,32], index: 3, kind: input, shape index: {}]   ;;  %s2881_s4 = inlined_call_operand.vmem [shape: f32[2,4,32,8], index: 4, kind: input, shape index: {}]   ;;  %s2882_s5 = inlined_call_operand.vmem [shape: f32[2,4,32,8], index: 5, kind: input, shape index: {}]   ;;  %s2883_s6 = inlined_call_operand.vmem [shape: f32[2,4,32,8], index: 6, kind: input, shape index: {}]   ;;  %s2884_s7 = inlined_call_operand.vmem [shape: f32[2,4,8,32], index: 7, kind: input, shape index: {}]   ;;  %s2885_s8 = inlined_call_operand.vmem [shape: f32[2,1,32], index: 8, kind: input, shape index: {}]   ;;  %s2886_s9 = inlined_call_operand.vmem [shape: f32[2,1,32], index: 9, kind: input, shape index: {}]   ;;  %s2887_s10 = inlined_call_operand.vmem [shape: f32[2,1,32], index: 10, kind: input, shape index: {}]   ;;  %s2888_s11 = inlined_call_operand.vmem [shape: f32[2,32,128], index: 11, kind: input, shape index: {}]   ;;  %s2889_s12 = inlined_call_operand.vmem [shape: f32[2,1,128], index: 12, kind: input, shape index: {}]   ;;  %s2890_s13 = inlined_call_operand.vmem [shape: f32[2,128,32], index: 13, kind: input, shape index: {}]   ;;  %s2891_s14 = inlined_call_operand.vmem [shape: f32[2,1,32], index: 14, kind: input, shape index: {}]   ;;  %s2892_s15 = inlined_call_operand.vmem [shape: f32[1,32], index: 15, kind: input, shape index: {}]   ;;  %s2893_s16 = inlined_call_operand.vmem [shape: f32[1,32], index: 16, kind: input, shape index: {}]   ;;  %s2894_s17 = inlined_call_operand.vmem [shape: f32[32,128], index: 17, kind: input, shape index: {}]   ;;  %s2895_s18 = inlined_call_operand.vmem [shape: f32[1,128], index: 18, kind: input, shape index: {}]   ;;  %s2896_s19 = inlined_call_operand.hbm [shape: f32[2,8,128], index: 19, kind: output, shape index: {}]  }
   0x1   :  { %2900 = sst [smem:[#allocation7_spill]] %s2877_s0 }
   0x2   :  { %2901 = sst [smem:[#allocation8_spill]] %s2878_s1 }
   0x3   :  { %2902 = sst [smem:[#allocation9_spill]] %s2879_s2 }
   0x4   :  { %2903 = sst [smem:[#allocation10_spill]] %s2880_s3 }
   0x5   :  { %2904 = sst [smem:[#allocation11_spill]] %s2881_s4 }
   0x6   :  { %2905 = sst [smem:[#allocation12_spill]] %s2882_s5 }
   0x7   :  { %2906 = sst [smem:[#allocation13_spill]] %s2883_s6 }
   0x8   :  { %2907 = sst [smem:[#allocation14_spill]] %s2884_s7 }
   0x9   :  { %2908 = sst [smem:[#allocation15_spill]] %s2892_s15 }
   0xa   :  { %2909 = sst [smem:[#allocation16_spill]] %s2893_s16 }
   0xb   :  { %2910 = sst [smem:[#allocation17_spill]] %s2894_s17 }
   0xc   :  { %2911 = sst [smem:[#allocation18_spill]] %s2895_s18 }
   0xd   :  { %2912 = sst [smem:[#allocation19_spill]] %s2896_s19 }
   0xe   :  { %24 = vsyncpa [#allocation4], 0  ;;  %s2503_s0 = smov 0  }
   0xf LB: > { %2913 = sst [smem:[#allocation6_spill]] %s2397_s0  ;;  %s2509_s30 = sadd.s32 4294967295, %s2397_s0   ;;  %s2397_s0 = sphi %s2503_s0, %s30_s0  }
  0x10   : > { %p2224_p0 = scmp.ge.s32.totalorder %s2397_s0, 1  ;;  %p639_p1 = scmp.lt.s32.totalorder %s2397_s0, 3 }
  0x12   : > { %p640_p2 = pnand %p2224_p0, %p639_p1 }
  0x13   : > { %p736_p3 = scmp.lt.s32.totalorder (!%p640_p2), %s2509_s30, 1  ;;  %s2916_s4 = sld [smem:[#allocation11_spill]] (!%p640_p2) }
  0x14   : > { %643 = sbr.rel (%p640_p2) target bundleno = 3753 (0xea9), region = 96  ;;  %s2917_s5 = sld [smem:[#allocation12_spill]] (!%p640_p2) }
  0x15   : > { %s2918_s6 = sld [smem:[#allocation13_spill]] (!%p640_p2)  ;;  %p2237_p4 = scmp.ne.s32.totalorder (!%p640_p2), %s2509_s30, 0 }
  0x16   : > { %s2919_s7 = sld [smem:[#allocation14_spill]] (!%p640_p2) }
  0x19   : > { %s2515_s20 = scalar_select %p736_p3, %s2509_s30, 1 }
  0x1b   : > { %s2277_s26 = sshll.u32 %s2515_s20, 7  ;;  %s2280_s27 = sshll.u32 %s2515_s20, 5 }
  0x1c   : > { %s2530_s0 = scalar_lea.vmem %s2916_s4, %s2277_s26  ;;  %s2535_s19 = scalar_lea.vmem %s2917_s5, %s2277_s26 }
  0x1d   : > { %s2540_s22 = scalar_lea.vmem %s2918_s6, %s2277_s26  ;;  %s2545_s24 = scalar_lea.vmem %s2919_s7, %s2280_s27 }
  0x1e   : > { %s764_s28 = scalar_lea.vmem %s2885_s8, %s2515_s20  ;;  %s770_s15 = scalar_lea.vmem %s2887_s10, %s2515_s20 }
  0x1f   : > { %s2562_s6 = scalar_lea.vmem %s2888_s11, %s2280_s27  ;;  %s778_s7 = scalar_lea.vmem %s2889_s12, %s2515_s20 }
  0x20   : > { %s2571_s25 = scalar_lea.vmem %s2890_s13, %s2277_s26  ;;  %s786_s21 = scalar_lea.vmem %s2891_s14, %s2515_s20 }
  0x21   : > { %791 = sbr.rel (%p2237_p4) target bundleno = 42 (0x2a), region = 100  ;;  %s2920_s27 = sld [smem:[#allocation7_spill]] (!%p2237_p4) }
  0x26   : > { %vm794_vm0 = vcmask 261120  }
  0x27   : > { %v792_v0 = vld [vmem:[%s2920_s27] sm:$0xff]  ;;  %v793_v1 = vld [vmem:[%s2920_s27 + $0x8] sm:$0xff] }
  0x28   : > { %795 = vst.msk [vmem:[#allocation2] sm:$0xff] %vm794_vm0, %v792_v0 }
  0x29   : > { %796 = vst.msk [vmem:[#allocation2 + $0x8] sm:$0xff] %vm794_vm0, %v793_v1 }
  0x2a PF: > { %vm801_vm1 = vcmask 261120   ;;  %v2399_v6 = vmov 32.0   ;;  %v867_v23 = vld [vmem:[%s2530_s0 + $0x10] sm:$0xff]  ;;  %v868_v24 = vld [vmem:[%s2530_s0 + $0x18] sm:$0xff]  ;;  %v865_v35 = vld [vmem:[%s2530_s0] sm:$0xff]  ;;  %s2921_s2 = sld [smem:[#allocation9_spill]] }
  0x2b   : > { %2308 = vrcp.f32 %v2399_v6  ;;  %v899_v25 = vld [vmem:[%s2535_s19 + $0x10] sm:$0xff]  ;;  %v883_v26 = vpack.c.bf16 %v867_v23, %v867_v23  ;;  %v884_v27 = vpack.c.bf16 %v868_v24, %v868_v24  ;;  %v900_v28 = vld [vmem:[%s2535_s19 + $0x18] sm:$0xff]  ;;  %v866_v36 = vld [vmem:[%s2530_s0 + $0x8] sm:$0xff]  ;;  %v881_v39 = vpack.c.bf16 %v865_v35, %v865_v35  ;;  %s2923_s29 = sld [smem:[#allocation10_spill]]  ;;  %p2271_p5 = scmp.ne.s32.totalorder %s2509_s30, 1 }
  0x2c   : > { %v915_v29 = vpack.c.bf16 %v899_v25, %v899_v25  ;;  %v916_v30 = vpack.c.bf16 %v900_v28, %v900_v28  ;;  %v897_v37 = vld [vmem:[%s2535_s19] sm:$0xff]  ;;  %v882_v40 = vpack.c.bf16 %v866_v36, %v866_v36  ;;  %v898_v41 = vld [vmem:[%s2535_s19 + $0x8] sm:$0xff]  ;;  %v931_v54 = vld [vmem:[%s2540_s22 + $0x10] sm:$0xff]  ;;  %vm1059_vm9 = vcmask 64512   ;;  %s2925_s18 = sld [smem:[#allocation8_spill]] }
  0x2d   : > { %v980_v31 = vunpack.c.l.b16 %v883_v26  ;;  %v981_v32 = vunpack.c.l.b16 %v884_v27  ;;  %v913_v42 = vpack.c.bf16 %v897_v37, %v897_v37  ;;  %v914_v44 = vpack.c.bf16 %v898_v41, %v898_v41  ;;  %v932_v55 = vld [vmem:[%s2540_s22 + $0x18] sm:$0xff]  ;;  %v929_v56 = vld [vmem:[%s2540_s22] sm:$0xff]  ;;  %v930_v60 = vld [vmem:[%s2540_s22 + $0x8] sm:$0xff] }
  0x2e   : > { %v1009_v33 = vunpack.c.l.b16 %v915_v29  ;;  %v1010_v34 = vunpack.c.l.b16 %v916_v30  ;;  %v978_v46 = vunpack.c.l.b16 %v881_v39  ;;  %v979_v47 = vunpack.c.l.b16 %v882_v40  ;;  %v869_v37 = vld [vmem:[%s2530_s0 + $0x20] sm:$0xff] }
  0x2f   : > { %v797_v2 = vld [vmem:[#allocation2] sm:$0xff]  ;;  %v983_v38 = vpack.c.b16 %v981_v32, %v980_v31  ;;  %v1007_v48 = vunpack.c.l.b16 %v913_v42  ;;  %v1008_v50 = vunpack.c.l.b16 %v914_v44  ;;  %v947_v58 = vpack.c.bf16 %v931_v54, %v931_v54 }
  0x30   : > { %v802_v3 = vsel %vm801_vm1, %v797_v2, 0.0  ;;  %v798_v4 = vld [vmem:[#allocation2 + $0x8] sm:$0xff]  ;;  %v1012_v43 = vpack.c.b16 %v1010_v34, %v1009_v33  ;;  %v982_v51 = vpack.c.b16 %v979_v47, %v978_v46  ;;  %v948_v59 = vpack.c.bf16 %v932_v55, %v932_v55  ;;  %s2922_s23 = scalar_lea.vmem %s2921_s2, %s2515_s20  ;;  %v872_v33 = vld [vmem:[%s2530_s0 + $0x38] sm:$0xff] }
  0x31   : > { %803 = vadd.xlane.f32.xlu0 %v802_v3  ;;  %v805_v5 = vsel %vm801_vm1, %v798_v4, 0.0  ;;  %v2309_v7 = vpop.eup %2308  ;;  %995 = vmatpush.bf16.msra.mxu0 %v983_v38  ;;  %v1011_v53 = vpack.c.b16 %v1008_v50, %v1007_v48  ;;  %v945_v61 = vpack.c.bf16 %v929_v56, %v929_v56  ;;  %v946_v63 = vpack.c.bf16 %v930_v60, %v930_v60  ;;  %s2924_s5 = scalar_lea.vmem %s2923_s29, %s2515_s20  ;;  %v870_v38 = vld [vmem:[%s2530_s0 + $0x28] sm:$0xff] }
  0x32   : > { %v809_v8 = vmul.f32 32.0, %v2309_v7  ;;  %vm813_vm2 = vweird.f32 %v2309_v7  ;;  %1021 = vmatpush.bf16.msra.mxu2 %v1012_v43  ;;  %v1035_v0 = vunpack.c.l.b16 %v947_v58  ;;  %v1036_v1 = vunpack.c.l.b16 %v948_v59  ;;  %v2302_v26 = vld [vmem:[%s2924_s5] ss:$0 sm:$0xff] }
  0x33   : > { %v888_v35 = vpack.c.bf16 %v872_v33, %v872_v33  ;;  %v885_v43 = vpack.c.bf16 %v869_v37, %v869_v37  ;;  %v886_v44 = vpack.c.bf16 %v870_v38, %v870_v38  ;;  %vm1131_vm10 = vcmask 1043456  }
  0x34   : > { %v810_v9 = vsub.f32 1.0, %v809_v8 }
  0x35   : > { %996 = vmatpush.bf16.msra.mxu0 %v982_v51  ;;  %v1197_v42 = vunpack.c.l.b16 %v888_v35  ;;  %v1195_v50 = vunpack.c.l.b16 %v886_v44 }
  0x36   : > { %v811_v10 = vmul.f32 %v2309_v7, %v810_v9  ;;  %1022 = vmatpush.bf16.msra.mxu2 %v1011_v53 }
  0x38   : > { %v812_v11 = vadd.f32 %v2309_v7, %v811_v10 }
  0x39   : > { %806 = vadd.xlane.f32.xlu0 %v805_v5  ;;  %v1034_v5 = vunpack.c.l.b16 %v946_v63 }
  0x3a   : > { %v2586_v12 = vsel %vm813_vm2, %v2309_v7, %v812_v11  ;;  %v1038_v7 = vpack.c.b16 %v1036_v1, %v1035_v0 }
  0x3c   : > { %1047 = vmatpush.bf16.msrb.mxu2 %v1038_v7 }
  0xa4   : > { %v804_v13 = vpop.xlane.xlu0 %803 }
  0xa5   : > { %v815_v14 = vmul.f32 %v2586_v12, %v804_v13 }
  0xa7   : > { %v2589_v15 = vsub.f32 %v797_v2, %v815_v14  ;;  %v1033_v2 = vunpack.c.l.b16 %v945_v61 }
  0xa9   : > { %v819_v16 = vmul.f32 %v2589_v15, %v2589_v15  ;;  %v1037_v9 = vpack.c.b16 %v1034_v5, %v1033_v2 }
  0xab   : > { %v821_v17 = vsel %vm801_vm1, %v819_v16, 0.0  ;;  %1048 = vmatpush.bf16.msrb.mxu2 %v1037_v9 }
  0xac   : > { %822 = vadd.xlane.f32.xlu1 %v821_v17  ;;  %v807_v18 = vpop.xlane.xlu0 %806 }
  0xad   : > { %v816_v19 = vmul.f32 %v2586_v12, %v807_v18 }
  0xaf   : > { %v2595_v20 = vsub.f32 %v798_v4, %v816_v19 }
  0xb1   : > { %v820_v21 = vmul.f32 %v2595_v20, %v2595_v20 }
  0xb3   : > { %v824_v22 = vsel %vm801_vm1, %v820_v21, 0.0 }
  0xb4   : > { %825 = vadd.xlane.f32.xlu1 %v824_v22  ;;  %v2301_v22 = vld [vmem:[%s2922_s23] ss:$0 sm:$0xff] }
 0x11f   : > { %v823_v45 = vpop.xlane.xlu1 %822 }
 0x120   : > { %v827_v49 = vmul.f32 %v823_v45, %v2586_v12 }
 0x122   : > { %v829_v52 = vadd.f32 1e-05, %v827_v49  ;;  %v1194_v49 = vunpack.c.l.b16 %v885_v43 }
 0x124   : > { %2310 = vrsqrt.f32 %v829_v52  ;;  %vm837_vm4 = vweird.f32 %v829_v52 }
 0x127   : > { %v826_v57 = vpop.xlane.xlu1 %825 }
 0x128   : > { %v828_v62 = vmul.f32 %v826_v57, %v2586_v12 }
 0x12a   : > { %v2311_v3 = vpop.eup %2310  ;;  %v830_v4 = vadd.f32 1e-05, %v828_v62  ;;  %v2649_v62 = vld [vmem:[%s2925_s18] sm:$0xff] }
 0x12b   : > { %v832_v6 = vmul.f32 %v2311_v3, %v829_v52  ;;  %vm838_vm3 = vweird.f32 %v2311_v3  ;;  %v1198_v52 = vpack.c.b16 %v1195_v50, %v1194_v49 }
 0x12c   : > { %2312 = vrsqrt.f32 %v830_v4  ;;  %vm839_vm5 = vmor %vm837_vm4, %vm838_vm3  ;;  %vm847_vm7 = vweird.f32 %v830_v4 }
 0x12d   : > { %v833_v8 = vmul.f32 %v2311_v3, %v832_v6 }
 0x12f   : > { %v834_v10 = vmul.f32 0.5, %v833_v8 }
 0x131   : > { %v835_v11 = vsub.f32 1.5, %v834_v10 }
 0x132   : > { %v2313_v13 = vpop.eup %2312 }
 0x133   : > { %v836_v14 = vmul.f32 %v2311_v3, %v835_v11  ;;  %v842_v16 = vmul.f32 %v2313_v13, %v830_v4  ;;  %vm848_vm6 = vweird.f32 %v2313_v13 }
 0x134   : > { %vm849_vm8 = vmor %vm847_vm7, %vm848_vm6 }
 0x135   : > { %v843_v17 = vmul.f32 %v2313_v13, %v842_v16  ;;  %v840_v18 = vsel %vm839_vm5, %v2311_v3, %v836_v14 }
 0x136   : > { %v851_v23 = vmul.f32 %v840_v18, %v2589_v15  ;;  %v871_v15 = vld [vmem:[%s2530_s0 + $0x30] sm:$0xff] }
 0x137   : > { %v844_v19 = vmul.f32 0.5, %v843_v17 }
 0x138   : > { %v856_v27 = vmul.f32 %v2301_v22, %v851_v23 }
 0x139   : > { %v845_v21 = vsub.f32 1.5, %v844_v19 }
 0x13a   : > { %v861_v30 = vadd.f32 %v2302_v26, %v856_v27  ;;  %v901_v27 = vld [vmem:[%s2535_s19 + $0x20] sm:$0xff] }
 0x13b   : > { %v846_v24 = vmul.f32 %v2313_v13, %v845_v21  ;;  %v903_v21 = vld [vmem:[%s2535_s19 + $0x30] sm:$0xff] }
 0x13c   : > { %v919_v23 = vpack.c.bf16 %v903_v21, %v903_v21 }
 0x13d   : > { %v850_v25 = vsel %vm849_vm8, %v2313_v13, %v846_v24 }
 0x13e   : > { %v852_v28 = vmul.f32 %v850_v25, %v2595_v20  ;;  %v887_v20 = vpack.c.bf16 %v871_v15, %v871_v15  ;;  %v1222_v25 = vunpack.c.l.b16 %v919_v23 }
 0x140   : > { %v857_v29 = vmul.f32 %v2301_v22, %v852_v28  ;;  %v1196_v41 = vunpack.c.l.b16 %v887_v20  ;;  %v904_v22 = vld [vmem:[%s2535_s19 + $0x38] sm:$0xff]  ;;  %v902_v28 = vld [vmem:[%s2535_s19 + $0x28] sm:$0xff] }
 0x141   : > { %v920_v24 = vpack.c.bf16 %v904_v22, %v904_v22  ;;  %v936_v20 = vld [vmem:[%s2540_s22 + $0x38] sm:$0xff] }
 0x142   : > { %v862_v31 = vadd.f32 %v2302_v26, %v857_v29  ;;  %v1199_v46 = vpack.c.b16 %v1197_v42, %v1196_v41  ;;  %v952_v37 = vpack.c.bf16 %v936_v20, %v936_v20  ;;  %v934_v41 = vld [vmem:[%s2540_s22 + $0x28] sm:$0xff] }
 0x143   : > { %v1223_v26 = vunpack.c.l.b16 %v920_v24  ;;  %v950_v44 = vpack.c.bf16 %v934_v41, %v934_v41 }
 0x144   : > { %v2626_v32 = vpack.c.bf16 %v862_v31, %v861_v30  ;;  %v917_v30 = vpack.c.bf16 %v901_v27, %v901_v27  ;;  %v918_v31 = vpack.c.bf16 %v902_v28, %v902_v28 }
 0x145   : > { %v1225_v29 = vpack.c.b16 %v1223_v26, %v1222_v25 }
 0x146   : > { %2238 = vmatmul.msk.bf16.vlgmr.msra.gmra.mxu0 %vm801_vm1, %v2626_v32  ;;  %2239 = vmatmul.msk.bf16.vlgmr.msra.gmra.mxu2 %vm801_vm1, %v2626_v32  ;;  %v1220_v15 = vunpack.c.l.b16 %v917_v30  ;;  %v1221_v33 = vunpack.c.l.b16 %v918_v31 }
 0x148   : > { %v1224_v35 = vpack.c.b16 %v1221_v33, %v1220_v15 }
 0x156   : > { %2240 = vmatmul.msk.bf16.vlgmr.msrb.gmra.mxu2 %vm801_vm1, %v2626_v32 }
 0x1c3   : > { %v998_v40 = vpop.f32.mrf.mxu0 }
 0x1c4   : > { %v1055_v47 = vpack.c.bf16 %v998_v40, %v998_v40  ;;  %v933_v40 = vld [vmem:[%s2540_s22 + $0x20] sm:$0xff] }
 0x1c5   : > { %v949_v43 = vpack.c.bf16 %v933_v40, %v933_v40 }
 0x1c9   : > { %v1024_v34 = vpop.f32.mrf.mxu2 }
 0x1ca   : > { %v1057_v36 = vpack.c.bf16 %v1024_v34, %v1024_v34  ;;  %v935_v34 = vld [vmem:[%s2540_s22 + $0x30] sm:$0xff] }
 0x1cb   : > { %v1000_v53 = vpop.f32.mrf.mxu0 }
 0x1cc   : > { %v1064_v39 = vsel %vm1059_vm9, %v1057_v36, 0  ;;  %v1056_v55 = vpack.c.bf16 %v1000_v53, %v1000_v53  ;;  %v951_v36 = vpack.c.bf16 %v935_v34, %v935_v34 }
 0x1cd   : > { %1073 = vmatpush.bf16.xpose.msra.mxu3 %v1064_v39  ;;  %v1249_v39 = vunpack.c.l.b16 %v952_v37 }
 0x1ce   : > { %v1248_v38 = vunpack.c.l.b16 %v951_v36 }
 0x1d0   : > { %v1251_v42 = vpack.c.b16 %v1249_v39, %v1248_v38 }
 0x1d1   : > { %v1026_v45 = vpop.f32.mrf.mxu2 }
 0x1d2   : > { %v1058_v48 = vpack.c.bf16 %v1026_v45, %v1026_v45  ;;  %v1246_v45 = vunpack.c.l.b16 %v949_v43 }
 0x1d4   : > { %2241 = vmatmul.msk.bf16.vlgmr.msra.gmra.mxu3 %vm1059_vm9, %v1055_v47  ;;  %v1083_v51 = vsel %vm1059_vm9, %v1058_v48, 0 }
 0x1d5   : > { %1092 = vmatpush.bf16.xpose.msrb.mxu0 %v1083_v51 }
 0x1d9   : > { %v1050_v54 = vpop.f32.mrf.mxu2 }
 0x1da   : > { %v1126_v56 = vpack.c.bf16 %v1050_v54, %v1050_v54 }
 0x1dc   : > { %2242 = vmatmul.msk.bf16.vlgmr.msrb.gmra.mxu0 %vm1059_vm9, %v1056_v55  ;;  %v1133_v57 = vsel %vm1131_vm10, %v1126_v56, 0  ;;  %v961_v56 = vld [vmem:[%s2545_s24] sm:$0xff] }
 0x1dd   : > { %1208 = vmatpush.bf16.msra.mxu0 %v1199_v46  ;;  %1142 = vmatpush.bf16.msra.mxu1 %v1133_v57  ;;  %v1247_v46 = vunpack.c.l.b16 %v950_v44  ;;  %v965_v57 = vpack.c.bf16 %v961_v56, %v961_v56  ;;  %v940_v56 = vld [vmem:[%s2540_s22 + $0x58] sm:$0xff] }
 0x1df   : > { %v1250_v47 = vpack.c.b16 %v1247_v46, %v1246_v45 }
 0x1e1   : > { %1209 = vmatpush.bf16.msra.mxu0 %v1198_v52  ;;  %v1052_v58 = vpop.f32.mrf.mxu2  ;;  %1234 = vmatpush.bf16.msrb.mxu1 %v1225_v29 }
 0x1e2   : > { %v1127_v59 = vpack.c.bf16 %v1052_v58, %v1052_v58  ;;  %v1172_v58 = vsel %vm1131_vm10, %v965_v57, 0 }
 0x1e3   : > { %1181 = vmatpush.bf16.msrb.mxu3 %v1172_v58  ;;  %v956_v58 = vpack.c.bf16 %v940_v56, %v940_v56 }
 0x1e4   : > { %v1152_v60 = vsel %vm1131_vm10, %v1127_v59, 0 }
 0x1e5   : > { %1161 = vmatpush.bf16.msra.mxu2 %v1152_v60  ;;  %1235 = vmatpush.bf16.msrb.mxu1 %v1224_v35 }
 0x1e9   : > { %1260 = vmatpush.bf16.msrb.mxu2 %v1251_v42 }
 0x1ec   : > { %2246 = vmatmul.msk.bf16.vlgmr.msra.gmra.mxu0 %vm801_vm1, %v2626_v32 }
 0x1ed   : > { %1261 = vmatpush.bf16.msrb.mxu2 %v1250_v47 }
 0x257   : > { %v1075_v61 = vpop.f32.mrf.mxu3 }
 0x258   : > { %v1098_v63 = vmul.f32 0.35355338, %v1075_v61 }
 0x259   : > { %v1094_v0 = vpop.f32.mrf.mxu0 }
 0x25a   : > { %v1100_v1 = vadd.f32 %v1098_v63, %v2649_v62  ;;  %v1099_v2 = vmul.f32 0.35355338, %v1094_v0  ;;  %v875_v63 = vld [vmem:[%s2530_s0 + $0x50] sm:$0xff]  ;;  %v876_v0 = vld [vmem:[%s2530_s0 + $0x58] sm:$0xff] }
 0x25c   : > { %v1102_v3 = vsel %vm1059_vm9, %v1100_v1, -inf  ;;  %v1101_v5 = vadd.f32 %v1099_v2, %v2649_v62 }
 0x25d   : > { %1103 = vmax.xlane.f32.xlu2 %v1102_v3 }
 0x25e   : > { %v1105_v7 = vsel %vm1059_vm9, %v1101_v5, -inf }
 0x25f   : > { %v1077_v4 = vpop.f32.mrf.mxu3 }
 0x260   : > { %v891_v4 = vpack.c.bf16 %v875_v63, %v875_v63 }
 0x261   : > { %v1096_v6 = vpop.f32.mrf.mxu0 }
 0x262   : > { %v873_v6 = vld [vmem:[%s2530_s0 + $0x40] sm:$0xff] }
 0x265   : > { %1106 = vmax.xlane.f32.xlu2 %v1105_v7  ;;  %v874_v7 = vld [vmem:[%s2530_s0 + $0x48] sm:$0xff] }
 0x2d0   : > { %v1104_v8 = vpop.xlane.xlu2 %1103 }
 0x2d1   : > { %v1108_v9 = vsub.f32 %v1100_v1, %v1104_v8 }
 0x2d3   : > { %v1110_v10 = vmul.f32 1.442695, %v1108_v9  ;;  %v1211_v9 = vpop.f32.mrf.mxu0 }
 0x2d4   : > { %v1268_v27 = vpack.c.bf16 %v1211_v9, %v1211_v9 }
 0x2d5   : > { %2314 = vpow2.f32 %v1110_v10  ;;  %v1407_v10 = vunpack.c.l.b16 %v891_v4 }
 0x2d8   : > { %v1107_v11 = vpop.xlane.xlu2 %1106 }
 0x2d9   : > { %v1109_v13 = vsub.f32 %v1101_v5, %v1107_v11  ;;  %v892_v5 = vpack.c.bf16 %v876_v0, %v876_v0  ;;  %v1460_v0 = vunpack.c.l.b16 %v956_v58 }
 0x2db   : > { %v2315_v14 = vpop.eup %2314  ;;  %v1112_v16 = vmul.f32 1.442695, %v1109_v13  ;;  %v1408_v11 = vunpack.c.l.b16 %v892_v5  ;;  %v889_v13 = vpack.c.bf16 %v873_v6, %v873_v6  ;;  %v1213_v25 = vpop.f32.mrf.mxu0 }
 0x2dc   : > { %v1114_v17 = vsel %vm1059_vm9, %v2315_v14, 0.0  ;;  %v1269_v29 = vpack.c.bf16 %v1213_v25, %v1213_v25 }
 0x2dd   : > { %2316 = vpow2.f32 %v1112_v16  ;;  %1115 = vadd.xlane.f32.xlu0 %v1114_v17  ;;  %v1405_v21 = vunpack.c.l.b16 %v889_v13 }
 0x2e3   : > { %v2317_v18 = vpop.eup %2316 }
 0x2e4   : > { %v1117_v19 = vsel %vm1059_vm9, %v2317_v18, 0.0 }
 0x2e5   : > { %1118 = vadd.xlane.f32.xlu1 %v1117_v19  ;;  %v1410_v19 = vpack.c.b16 %v1408_v11, %v1407_v10 }
 0x350   : > { %v1116_v48 = vpop.xlane.xlu0 %1115 }
 0x351   : > { %2318 = vrcp.f32 %v1116_v48 }
 0x357   : > { %v2319_v49 = vpop.eup %2318 }
 0x358   : > { %v1119_v50 = vpop.xlane.xlu1 %1118  ;;  %v1122_v51 = vmul.f32 %v2319_v49, %v2315_v14  ;;  %v890_v14 = vpack.c.bf16 %v874_v7, %v874_v7 }
 0x359   : > { %2320 = vrcp.f32 %v1119_v50 }
 0x35a   : > { %v1124_v52 = vpack.c.bf16 %v1122_v51, %v1122_v51  ;;  %v1406_v22 = vunpack.c.l.b16 %v890_v14  ;;  %v905_v14 = vld [vmem:[%s2535_s19 + $0x40] sm:$0xff] }
 0x35c   : > { %2243 = vmatmul.msk.bf16.vlgmr.msra.gmra.mxu1 %vm1059_vm9, %v1124_v52  ;;  %v1409_v24 = vpack.c.b16 %v1406_v22, %v1405_v21 }
 0x35f   : > { %v2321_v53 = vpop.eup %2320 }
 0x360   : > { %v1123_v54 = vmul.f32 %v2321_v53, %v2317_v18 }
 0x362   : > { %v1125_v55 = vpack.c.bf16 %v1123_v54, %v1123_v54 }
 0x364   : > { %2244 = vmatmul.msk.bf16.vlgmr.msra.gmra.mxu2 %vm1059_vm9, %v1125_v55  ;;  %v939_v55 = vld [vmem:[%s2540_s22 + $0x50] sm:$0xff] }
 0x365   : > { %v955_v57 = vpack.c.bf16 %v939_v55, %v939_v55 }
 0x367   : > { %v1459_v63 = vunpack.c.l.b16 %v955_v57 }
 0x369   : > { %v1462_v6 = vpack.c.b16 %v1460_v0, %v1459_v63 }
 0x36c   : > { %2247 = vmatmul.msk.bf16.vlgmr.msrb.gmra.mxu1 %vm801_vm1, %v2626_v32 }
 0x374   : > { %2248 = vmatmul.msk.bf16.vlgmr.msrb.gmra.mxu2 %vm801_vm1, %v2626_v32 }
 0x3d9   : > { %v1144_v59 = vpop.f32.mrf.mxu1 }
 0x3e1   : > { %v1146_v60 = vpop.f32.mrf.mxu1 }
 0x3e2   : > { %v908_v60 = vld [vmem:[%s2535_s19 + $0x58] sm:$0xff] }
 0x3e7   : > { %v1163_v61 = vpop.f32.mrf.mxu2 }
 0x3e8   : > { %v1167_v1 = vpack.c.bf16 %v1163_v61, %v1144_v59  ;;  %v907_v59 = vld [vmem:[%s2535_s19 + $0x50] sm:$0xff]  ;;  %v937_v61 = vld [vmem:[%s2540_s22 + $0x40] sm:$0xff] }
 0x3e9   : > { %v1237_v2 = vpop.f32.mrf.mxu1  ;;  %v953_v4 = vpack.c.bf16 %v937_v61, %v937_v61 }
 0x3ea   : > { %v1270_v3 = vpack.c.bf16 %v1237_v2, %v1237_v2  ;;  %2245 = vmatmul.msk.bf16.vlgmr.msrb.gmra.mxu3 %vm1059_vm9, %v1167_v1  ;;  %v923_v1 = vpack.c.bf16 %v907_v59, %v907_v59  ;;  %v924_v2 = vpack.c.bf16 %v908_v60, %v908_v60 }
 0x3eb   : > { %v1457_v9 = vunpack.c.l.b16 %v953_v4 }
 0x3ec   : > { %v1276_v8 = vsel %vm1059_vm9, %v1270_v3, 0  ;;  %v938_v3 = vld [vmem:[%s2540_s22 + $0x48] sm:$0xff]  ;;  %v1433_v7 = vunpack.c.l.b16 %v923_v1 }
 0x3ed   : > { %1285 = vmatpush.bf16.xpose.msra.mxu3 %v1276_v8  ;;  %v954_v5 = vpack.c.bf16 %v938_v3, %v938_v3  ;;  %v1434_v8 = vunpack.c.l.b16 %v924_v2 }
 0x3ef   : > { %v1165_v16 = vpop.f32.mrf.mxu2  ;;  %v1458_v10 = vunpack.c.l.b16 %v954_v5  ;;  %v1436_v11 = vpack.c.b16 %v1434_v8, %v1433_v7  ;;  %v2303_v7 = vld [vmem:[%s764_s28] ss:$0 sm:$0xff]  ;;  %s2930_s28 = sld [smem:[#allocation18_spill]] (!%p2271_p5) }
 0x3f0   : > { %v906_v16 = vld [vmem:[%s2535_s19 + $0x48] sm:$0xff] }
 0x3f1   : > { %v1239_v17 = vpop.f32.mrf.mxu1  ;;  %v1461_v13 = vpack.c.b16 %v1458_v10, %v1457_v9 }
 0x3f2   : > { %v1271_v18 = vpack.c.bf16 %v1239_v17, %v1239_v17  ;;  %v921_v17 = vpack.c.bf16 %v905_v14, %v905_v14 }
 0x3f4   : > { %v1295_v23 = vsel %vm1059_vm9, %v1271_v18, 0  ;;  %v922_v18 = vpack.c.bf16 %v906_v16, %v906_v16 }
 0x3f5   : > { %1304 = vmatpush.bf16.xpose.msrb.mxu0 %v1295_v23 }
 0x3f6   : > { %v1432_v21 = vunpack.c.l.b16 %v922_v18 }
 0x3f7   : > { %v1263_v26 = vpop.f32.mrf.mxu2 }
 0x3f8   : > { %v1338_v28 = vpack.c.bf16 %v1263_v26, %v1263_v26 }
 0x3fa   : > { %v1344_v30 = vsel %vm1131_vm10, %v1338_v28, 0  ;;  %2249 = vmatmul.msk.bf16.vlgmr.msra.gmra.mxu3 %vm1059_vm9, %v1268_v27 }
 0x3fb   : > { %1353 = vmatpush.bf16.msra.mxu1 %v1344_v30 }
 0x3fc   : > { %2250 = vmatmul.msk.bf16.vlgmr.msrb.gmra.mxu0 %vm1059_vm9, %v1269_v29 }
 0x3fd   : > { %1419 = vmatpush.bf16.msra.mxu0 %v1410_v19  ;;  %v1431_v19 = vunpack.c.l.b16 %v921_v17 }
 0x3ff   : > { %v1265_v31 = vpop.f32.mrf.mxu2  ;;  %1445 = vmatpush.bf16.msrb.mxu1 %v1436_v11  ;;  %v1435_v22 = vpack.c.b16 %v1432_v21, %v1431_v19 }
 0x400   : > { %v1339_v15 = vpack.c.bf16 %v1265_v31, %v1265_v31  ;;  %v962_v31 = vld [vmem:[%s2545_s24 + $0x8] sm:$0xff] }
 0x401   : > { %1420 = vmatpush.bf16.msra.mxu0 %v1409_v24 }
 0x402   : > { %v1363_v33 = vsel %vm1131_vm10, %v1339_v15, 0  ;;  %v966_v15 = vpack.c.bf16 %v962_v31, %v962_v31 }
 0x403   : > { %1372 = vmatpush.bf16.msra.mxu2 %v1363_v33  ;;  %1446 = vmatpush.bf16.msrb.mxu1 %v1435_v22 }
 0x404   : > { %v1383_v33 = vsel %vm1131_vm10, %v966_v15, 0 }
 0x405   : > { %1392 = vmatpush.bf16.msrb.mxu3 %v1383_v33 }
 0x407   : > { %1471 = vmatpush.bf16.msrb.mxu2 %v1462_v6 }
 0x40b   : > { %1472 = vmatpush.bf16.msrb.mxu2 %v1461_v13 }
 0x40c   : > { %2254 = vmatmul.msk.bf16.vlgmr.msra.gmra.mxu0 %vm801_vm1, %v2626_v32 }
 0x46d   : > { %v2686_v34 = vpop.f32.mrf.mxu3 }
 0x46e   : > { %v1188_v8 = vadd.f32 %v2303_v7, %v2686_v34 }
 0x475   : > { %v2688_v20 = vpop.f32.mrf.mxu3 }
 0x476   : > { %v1189_v11 = vadd.f32 %v2303_v7, %v2688_v20 }
 0x479   : > { %v1306_v35 = vpop.f32.mrf.mxu0 }
 0x47a   : > { %v1311_v36 = vmul.f32 0.35355338, %v1306_v35 }
 0x47c   : > { %v1313_v37 = vadd.f32 %v1311_v36, %v2649_v62 }
 0x47d   : > { %v1287_v38 = vpop.f32.mrf.mxu3 }
 0x47e   : > { %v1310_v39 = vmul.f32 0.35355338, %v1287_v38  ;;  %v1317_v40 = vsel %vm1059_vm9, %v1313_v37, -inf }
 0x47f   : > { %1318 = vmax.xlane.f32.xlu0 %v1317_v40  ;;  %v879_v40 = vld [vmem:[%s2530_s0 + $0x70] sm:$0xff] }
 0x480   : > { %v1312_v41 = vadd.f32 %v1310_v39, %v2649_v62 }
 0x481   : > { %v1308_v42 = vpop.f32.mrf.mxu0 }
 0x482   : > { %v1314_v43 = vsel %vm1059_vm9, %v1312_v41, -inf }
 0x483   : > { %1315 = vmax.xlane.f32.xlu2 %v1314_v43 }
 0x485   : > { %v1289_v44 = vpop.f32.mrf.mxu3 }
 0x486   : > { %v895_v44 = vpack.c.bf16 %v879_v40, %v879_v40 }
 0x4f2   : > { %v1319_v45 = vpop.xlane.xlu0 %1318 }
 0x4f3   : > { %v1321_v46 = vsub.f32 %v1313_v37, %v1319_v45 }
 0x4f5   : > { %v1324_v47 = vmul.f32 1.442695, %v1321_v46  ;;  %v877_v46 = vld [vmem:[%s2530_s0 + $0x60] sm:$0xff] }
 0x4f6   : > { %v1316_v48 = vpop.xlane.xlu2 %1315 }
 0x4f7   : > { %2322 = vpow2.f32 %v1324_v47  ;;  %v1320_v49 = vsub.f32 %v1312_v41, %v1316_v48  ;;  %v880_v41 = vld [vmem:[%s2530_s0 + $0x78] sm:$0xff]  ;;  %v878_v48 = vld [vmem:[%s2530_s0 + $0x68] sm:$0xff]  ;;  %s2928_s0 = sld [smem:[#allocation15_spill]] (!%p2271_p5) }
 0x4f8   : > { %v896_v45 = vpack.c.bf16 %v880_v41, %v880_v41  ;;  %v894_v56 = vpack.c.bf16 %v878_v48, %v878_v48  ;;  %v944_v41 = vld [vmem:[%s2540_s22 + $0x78] sm:$0xff]  ;;  %v941_v48 = vld [vmem:[%s2540_s22 + $0x60] sm:$0xff] }
 0x4f9   : > { %v1322_v50 = vmul.f32 1.442695, %v1320_v49 }
 0x4fa   : > { %v1619_v55 = vunpack.c.l.b16 %v896_v45  ;;  %v1617_v63 = vunpack.c.l.b16 %v894_v56  ;;  %v960_v45 = vpack.c.bf16 %v944_v41, %v944_v41 }
 0x4fb   : > { %2324 = vpow2.f32 %v1322_v50 }
 0x4fd   : > { %v2323_v51 = vpop.eup %2322 }
 0x4fe   : > { %v1329_v52 = vsel %vm1059_vm9, %v2323_v51, 0.0 }
 0x4ff   : > { %1330 = vadd.xlane.f32.xlu2 %v1329_v52  ;;  %v893_v52 = vpack.c.bf16 %v877_v46, %v877_v46 }
 0x501   : > { %v2325_v53 = vpop.eup %2324  ;;  %v1616_v61 = vunpack.c.l.b16 %v893_v52 }
 0x502   : > { %v1326_v54 = vsel %vm1059_vm9, %v2325_v53, 0.0 }
 0x503   : > { %1327 = vadd.xlane.f32.xlu1 %v1326_v54  ;;  %v1618_v54 = vunpack.c.l.b16 %v895_v44  ;;  %v1620_v4 = vpack.c.b16 %v1617_v63, %v1616_v61  ;;  %v910_v44 = vld [vmem:[%s2535_s19 + $0x68] sm:$0xff] }
 0x505   : > { %v1621_v60 = vpack.c.b16 %v1619_v55, %v1618_v54  ;;  %v1671_v54 = vunpack.c.l.b16 %v960_v45 }
 0x572   : > { %v1331_v23 = vpop.xlane.xlu2 %1330 }
 0x573   : > { %2326 = vrcp.f32 %v1331_v23 }
 0x576   : > { %v1328_v24 = vpop.xlane.xlu1 %1327 }
 0x577   : > { %2328 = vrcp.f32 %v1328_v24 }
 0x579   : > { %v2327_v25 = vpop.eup %2326 }
 0x57a   : > { %v1335_v26 = vmul.f32 %v2327_v25, %v2323_v51  ;;  %v1422_v51 = vpop.f32.mrf.mxu0 }
 0x57b   : > { %v1479_v57 = vpack.c.bf16 %v1422_v51, %v1422_v51 }
 0x57c   : > { %v1337_v27 = vpack.c.bf16 %v1335_v26, %v1335_v26 }
 0x57d   : > { %v2329_v28 = vpop.eup %2328 }
 0x57e   : > { %v1334_v29 = vmul.f32 %v2329_v28, %v2325_v53  ;;  %2252 = vmatmul.msk.bf16.vlgmr.msra.gmra.mxu2 %vm1059_vm9, %v1337_v27 }
 0x580   : > { %v1336_v30 = vpack.c.bf16 %v1334_v29, %v1334_v29 }
 0x582   : > { %2251 = vmatmul.msk.bf16.vlgmr.msra.gmra.mxu1 %vm1059_vm9, %v1336_v30  ;;  %v1424_v5 = vpop.f32.mrf.mxu0 }
 0x583   : > { %v1480_v6 = vpack.c.bf16 %v1424_v5, %v1424_v5 }
 0x58e   : > { %2256 = vmatmul.msk.bf16.vlgmr.msrb.gmra.mxu2 %vm801_vm1, %v2626_v32 }
 0x592   : > { %2255 = vmatmul.msk.bf16.vlgmr.msrb.gmra.mxu1 %vm801_vm1, %v2626_v32 }
 0x5ff   : > { %v1355_v35 = vpop.f32.mrf.mxu1 }
 0x601   : > { %v1374_v36 = vpop.f32.mrf.mxu2 }
 0x602   : > { %v1378_v37 = vpack.c.bf16 %v1374_v36, %v1355_v35  ;;  %v911_v36 = vld [vmem:[%s2535_s19 + $0x70] sm:$0xff] }
 0x604   : > { %2253 = vmatmul.msk.bf16.vlgmr.msrb.gmra.mxu3 %vm1059_vm9, %v1378_v37  ;;  %v912_v37 = vld [vmem:[%s2535_s19 + $0x78] sm:$0xff] }
 0x605   : > { %v928_v40 = vpack.c.bf16 %v912_v37, %v912_v37 }
 0x607   : > { %v1357_v38 = vpop.f32.mrf.mxu1  ;;  %v1645_v51 = vunpack.c.l.b16 %v928_v40 }
 0x608   : > { %v943_v38 = vld [vmem:[%s2540_s22 + $0x70] sm:$0xff] }
 0x609   : > { %v1376_v39 = vpop.f32.mrf.mxu2 }
 0x60a   : > { %v927_v39 = vpack.c.bf16 %v911_v36, %v911_v36 }
 0x60f   : > { %v1448_v42 = vpop.f32.mrf.mxu1 }
 0x610   : > { %v1481_v43 = vpack.c.bf16 %v1448_v42, %v1448_v42  ;;  %v959_v42 = vpack.c.bf16 %v943_v38, %v943_v38 }
 0x611   : > { %v1474_v47 = vpop.f32.mrf.mxu2 }
 0x612   : > { %v1487_v49 = vsel %vm1059_vm9, %v1481_v43, 0  ;;  %v1549_v50 = vpack.c.bf16 %v1474_v47, %v1474_v47  ;;  %v909_v43 = vld [vmem:[%s2535_s19 + $0x60] sm:$0xff]  ;;  %v926_v47 = vpack.c.bf16 %v910_v44, %v910_v44  ;;  %v1670_v52 = vunpack.c.l.b16 %v959_v42  ;;  %s2929_s19 = sld [smem:[#allocation16_spill]] (!%p2271_p5) }
 0x613   : > { %1496 = vmatpush.bf16.xpose.msra.mxu3 %v1487_v49  ;;  %v925_v46 = vpack.c.bf16 %v909_v43, %v909_v43  ;;  %v942_v49 = vld [vmem:[%s2540_s22 + $0x68] sm:$0xff]  ;;  %s2926_s22 = scalar_lea.vmem %s2886_s9, %s2515_s20 }
 0x614   : > { %v1555_v53 = vsel %vm1131_vm10, %v1549_v50, 0  ;;  %v1644_v50 = vunpack.c.l.b16 %v927_v39  ;;  %v1643_v56 = vunpack.c.l.b16 %v926_v47 }
 0x615   : > { %1564 = vmatpush.bf16.msra.mxu1 %v1555_v53  ;;  %v957_v53 = vpack.c.bf16 %v941_v48, %v941_v48  ;;  %v1642_v55 = vunpack.c.l.b16 %v925_v46 }
 0x617   : > { %v1450_v58 = vpop.f32.mrf.mxu1  ;;  %v1646_v63 = vpack.c.b16 %v1643_v56, %v1642_v55 }
 0x618   : > { %v1482_v59 = vpack.c.bf16 %v1450_v58, %v1450_v58  ;;  %v1647_v58 = vpack.c.b16 %v1645_v51, %v1644_v50 }
 0x619   : > { %v1476_v0 = vpop.f32.mrf.mxu2 }
 0x61a   : > { %v1506_v1 = vsel %vm1059_vm9, %v1482_v59, 0  ;;  %v1550_v2 = vpack.c.bf16 %v1476_v0, %v1476_v0  ;;  %2257 = vmatmul.msk.bf16.vlgmr.msra.gmra.mxu3 %vm1059_vm9, %v1479_v57  ;;  %v958_v57 = vpack.c.bf16 %v942_v49, %v942_v49  ;;  %v1668_v59 = vunpack.c.l.b16 %v957_v53  ;;  %1656 = vmatpush.bf16.msrb.mxu1 %v1647_v58 }
 0x61b   : > { %1515 = vmatpush.bf16.xpose.msrb.mxu0 %v1506_v1 }
 0x61c   : > { %v1574_v3 = vsel %vm1131_vm10, %v1550_v2, 0  ;;  %v1669_v61 = vunpack.c.l.b16 %v958_v57 }
 0x61d   : > { %1583 = vmatpush.bf16.msra.mxu2 %v1574_v3 }
 0x61e   : > { %v1672_v0 = vpack.c.b16 %v1669_v61, %v1668_v59  ;;  %1657 = vmatpush.bf16.msrb.mxu1 %v1646_v63 }
 0x622   : > { %2258 = vmatmul.msk.bf16.vlgmr.msrb.gmra.mxu0 %vm1059_vm9, %v1480_v6 }
 0x623   : > { %1630 = vmatpush.bf16.msra.mxu0 %v1621_v60  ;;  %v1673_v60 = vpack.c.b16 %v1671_v54, %v1670_v52 }
 0x625   : > { %1682 = vmatpush.bf16.msrb.mxu2 %v1673_v60 }
 0x627   : > { %1631 = vmatpush.bf16.msra.mxu0 %v1620_v4 }
 0x629   : > { %1683 = vmatpush.bf16.msrb.mxu2 %v1672_v0 }
 0x632   : > { %2262 = vmatmul.msk.bf16.vlgmr.msra.gmra.mxu0 %vm801_vm1, %v2626_v32 }
 0x687   : > { %v1394_v9 = vpop.f32.mrf.mxu3 }
 0x688   : > { %v2731_v10 = vadd.f32 %v1394_v9, %v1188_v8  ;;  %v963_v9 = vld [vmem:[%s2545_s24 + $0x10] sm:$0xff] }
 0x68f   : > { %v1396_v13 = vpop.f32.mrf.mxu3 }
 0x690   : > { %v2734_v14 = vadd.f32 %v1396_v13, %v1189_v11  ;;  %v967_v11 = vpack.c.bf16 %v963_v9, %v963_v9 }
 0x692   : > { %v1594_v13 = vsel %vm1131_vm10, %v967_v11, 0 }
 0x693   : > { %1603 = vmatpush.bf16.msrb.mxu3 %v1594_v13 }
 0x69d   : > { %v1498_v16 = vpop.f32.mrf.mxu3 }
 0x69e   : > { %v1521_v17 = vmul.f32 0.35355338, %v1498_v16 }
 0x69f   : > { %v1517_v18 = vpop.f32.mrf.mxu0 }
 0x6a0   : > { %v1522_v19 = vmul.f32 0.35355338, %v1517_v18  ;;  %v1523_v21 = vadd.f32 %v1521_v17, %v2649_v62 }
 0x6a2   : > { %v1525_v22 = vsel %vm1059_vm9, %v1523_v21, -inf  ;;  %v1524_v23 = vadd.f32 %v1522_v19, %v2649_v62 }
 0x6a3   : > { %1526 = vmax.xlane.f32.xlu0 %v1525_v22 }
 0x6a4   : > { %v1528_v34 = vsel %vm1059_vm9, %v1524_v23, -inf }
 0x6a5   : > { %v1500_v24 = vpop.f32.mrf.mxu3  ;;  %1529 = vmax.xlane.f32.xlu1 %v1528_v34 }
 0x6a7   : > { %v1519_v20 = vpop.f32.mrf.mxu0 }
 0x6af   : > { %v1633_v24 = vpop.f32.mrf.mxu0 }
 0x716   : > { %v1527_v25 = vpop.xlane.xlu0 %1526 }
 0x717   : > { %v1531_v26 = vsub.f32 %v1523_v21, %v1527_v25  ;;  %v1690_v25 = vpack.c.bf16 %v1633_v24, %v1633_v24 }
 0x718   : > { %v1530_v27 = vpop.xlane.xlu1 %1529 }
 0x719   : > { %v1533_v28 = vmul.f32 1.442695, %v1531_v26  ;;  %v1532_v29 = vsub.f32 %v1524_v23, %v1530_v27 }
 0x71b   : > { %2330 = vpow2.f32 %v1533_v28  ;;  %v1535_v30 = vmul.f32 1.442695, %v1532_v29 }
 0x71d   : > { %2332 = vpow2.f32 %v1535_v30  ;;  %v1635_v30 = vpop.f32.mrf.mxu0 }
 0x721   : > { %v2331_v31 = vpop.eup %2330 }
 0x722   : > { %v1537_v15 = vsel %vm1059_vm9, %v2331_v31, 0.0 }
 0x723   : > { %v2333_v33 = vpop.eup %2332  ;;  %1538 = vadd.xlane.f32.xlu2 %v1537_v15  ;;  %v1691_v15 = vpack.c.bf16 %v1635_v30, %v1635_v30 }
 0x724   : > { %v1540_v35 = vsel %vm1059_vm9, %v2333_v33, 0.0 }
 0x725   : > { %1541 = vadd.xlane.f32.xlu0 %v1540_v35 }
 0x796   : > { %v1539_v1 = vpop.xlane.xlu2 %1538 }
 0x797   : > { %2334 = vrcp.f32 %v1539_v1 }
 0x798   : > { %v1542_v2 = vpop.xlane.xlu0 %1541 }
 0x799   : > { %2336 = vrcp.f32 %v1542_v2  ;;  %v964_v2 = vld [vmem:[%s2545_s24 + $0x18] sm:$0xff] }
 0x79d   : > { %v2335_v3 = vpop.eup %2334 }
 0x79e   : > { %v1545_v4 = vmul.f32 %v2335_v3, %v2331_v31  ;;  %v968_v3 = vpack.c.bf16 %v964_v2, %v964_v2 }
 0x79f   : > { %v2337_v5 = vpop.eup %2336 }
 0x7a0   : > { %v1547_v6 = vpack.c.bf16 %v1545_v4, %v1545_v4  ;;  %v1546_v7 = vmul.f32 %v2337_v5, %v2333_v33  ;;  %v1805_v4 = vsel %vm1131_vm10, %v968_v3, 0  ;;  %v2304_v3 = vld [vmem:[%s2926_s22] ss:$0 sm:$0xff] }
 0x7a2   : > { %v1548_v8 = vpack.c.bf16 %v1546_v7, %v1546_v7  ;;  %2259 = vmatmul.msk.bf16.vlgmr.msra.gmra.mxu1 %vm1059_vm9, %v1547_v6 }
 0x7a4   : > { %2260 = vmatmul.msk.bf16.vlgmr.msra.gmra.mxu2 %vm1059_vm9, %v1548_v8 }
 0x7b2   : > { %2263 = vmatmul.msk.bf16.vlgmr.msrb.gmra.mxu1 %vm801_vm1, %v2626_v32 }
 0x7b4   : > { %2264 = vmatmul.msk.bf16.vlgmr.msrb.gmra.mxu2 %vm801_vm1, %v2626_v32 }
 0x81f   : > { %v1566_v16 = vpop.f32.mrf.mxu1 }
 0x827   : > { %v1568_v17 = vpop.f32.mrf.mxu1  ;;  %v1585_v18 = vpop.f32.mrf.mxu2 }
 0x828   : > { %v1589_v19 = vpack.c.bf16 %v1585_v18, %v1566_v16  ;;  %v2350_v16 = vld [vmem:[#allocation2] sm:$0xff] }
 0x82a   : > { %2261 = vmatmul.msk.bf16.vlgmr.msrb.gmra.mxu3 %vm1059_vm9, %v1589_v19 }
 0x82f   : > { %v1587_v21 = vpop.f32.mrf.mxu2  ;;  %v1659_v22 = vpop.f32.mrf.mxu1 }
 0x830   : > { %v1692_v23 = vpack.c.bf16 %v1659_v22, %v1659_v22  ;;  %v2351_v22 = vld [vmem:[#allocation2 + $0x8] sm:$0xff] }
 0x832   : > { %v1698_v34 = vsel %vm1059_vm9, %v1692_v23, 0 }
 0x833   : > { %1707 = vmatpush.bf16.xpose.msra.mxu3 %v1698_v34 }
 0x837   : > { %v1661_v20 = vpop.f32.mrf.mxu1  ;;  %v1685_v32 = vpop.f32.mrf.mxu2 }
 0x838   : > { %v1693_v26 = vpack.c.bf16 %v1661_v20, %v1661_v20  ;;  %v1760_v27 = vpack.c.bf16 %v1685_v32, %v1685_v32 }
 0x83a   : > { %v1717_v28 = vsel %vm1059_vm9, %v1693_v26, 0  ;;  %v1766_v29 = vsel %vm1131_vm10, %v1760_v27, 0  ;;  %2265 = vmatmul.msk.bf16.vlgmr.msra.gmra.mxu3 %vm1059_vm9, %v1690_v25 }
 0x83b   : > { %1726 = vmatpush.bf16.xpose.msrb.mxu0 %v1717_v28  ;;  %1775 = vmatpush.bf16.msra.mxu1 %v1766_v29 }
 0x83c   : > { %1814 = vmatpush.bf16.msrb.mxu3 %v1805_v4 }
 0x83f   : > { %v1687_v31 = vpop.f32.mrf.mxu2 }
 0x840   : > { %v1761_v33 = vpack.c.bf16 %v1687_v31, %v1687_v31 }
 0x842   : > { %v1785_v35 = vsel %vm1131_vm10, %v1761_v33, 0  ;;  %2266 = vmatmul.msk.bf16.vlgmr.msrb.gmra.mxu0 %vm1059_vm9, %v1691_v15  ;;  %v1884_v15 = vld [vmem:[%s2562_s6 + $0x10] sm:$0xff]  ;;  %v1885_v33 = vld [vmem:[%s2562_s6 + $0x18] sm:$0xff] }
 0x843   : > { %1794 = vmatpush.bf16.msra.mxu2 %v1785_v35  ;;  %v1887_v35 = vpack.c.bf16 %v1885_v33, %v1884_v15 }
 0x845   : > { %1901 = vmatpush.bf16.msra.mxu0 %v1887_v35 }
 0x8ad   : > { %v1605_v36 = vpop.f32.mrf.mxu3 }
 0x8ae   : > { %v1610_v37 = vadd.f32 %v1605_v36, %v2731_v10 }
 0x8b5   : > { %v1607_v38 = vpop.f32.mrf.mxu3 }
 0x8b6   : > { %v1611_v39 = vadd.f32 %v1607_v38, %v2734_v14  ;;  %v1882_v38 = vld [vmem:[%s2562_s6] sm:$0xff] }
 0x8bd   : > { %v1709_v40 = vpop.f32.mrf.mxu3 }
 0x8be   : > { %v1732_v41 = vmul.f32 0.35355338, %v1709_v40 }
 0x8bf   : > { %v1728_v42 = vpop.f32.mrf.mxu0 }
 0x8c0   : > { %v1733_v43 = vmul.f32 0.35355338, %v1728_v42  ;;  %v1734_v44 = vadd.f32 %v1732_v41, %v2649_v62  ;;  %v1926_v42 = vld [vmem:[%s2571_s25 + $0x70] sm:$0xff] }
 0x8c2   : > { %v1736_v45 = vsel %vm1059_vm9, %v1734_v44, -inf  ;;  %v1735_v46 = vadd.f32 %v1733_v43, %v2649_v62  ;;  %v1927_v43 = vld [vmem:[%s2571_s25 + $0x78] sm:$0xff] }
 0x8c3   : > { %1737 = vmax.xlane.f32.xlu2 %v1736_v45 }
 0x8c4   : > { %v1739_v47 = vsel %vm1059_vm9, %v1735_v46, -inf }
 0x8c5   : > { %v1711_v48 = vpop.f32.mrf.mxu3  ;;  %1740 = vmax.xlane.f32.xlu1 %v1739_v47  ;;  %v1925_v47 = vld [vmem:[%s2571_s25 + $0x68] sm:$0xff] }
 0x8c7   : > { %v1730_v49 = vpop.f32.mrf.mxu0 }
 0x936   : > { %v1738_v10 = vpop.xlane.xlu2 %1737 }
 0x937   : > { %v1742_v50 = vsub.f32 %v1734_v44, %v1738_v10  ;;  %v1924_v44 = vld [vmem:[%s2571_s25 + $0x60] sm:$0xff] }
 0x938   : > { %v1741_v51 = vpop.xlane.xlu1 %1740  ;;  %v1934_v49 = vpack.c.bf16 %v1925_v47, %v1924_v44 }
 0x939   : > { %v1744_v14 = vmul.f32 1.442695, %v1742_v50  ;;  %v1743_v52 = vsub.f32 %v1735_v46, %v1741_v51  ;;  %v1935_v46 = vpack.c.bf16 %v1927_v43, %v1926_v42  ;;  %v1922_v51 = vld [vmem:[%s2571_s25 + $0x50] sm:$0xff] }
 0x93b   : > { %2338 = vpow2.f32 %v1744_v14  ;;  %v1746_v53 = vmul.f32 1.442695, %v1743_v52  ;;  %1940 = vmatpush.bf16.msrb.mxu1 %v1935_v46  ;;  %v1923_v14 = vld [vmem:[%s2571_s25 + $0x58] sm:$0xff] }
 0x93d   : > { %2340 = vpow2.f32 %v1746_v53 }
 0x93f   : > { %1941 = vmatpush.bf16.msrb.mxu1 %v1934_v49 }
 0x941   : > { %v2339_v54 = vpop.eup %2338 }
 0x942   : > { %v1748_v55 = vsel %vm1059_vm9, %v2339_v54, 0.0 }
 0x943   : > { %v2341_v56 = vpop.eup %2340  ;;  %1749 = vadd.xlane.f32.xlu1 %v1748_v55  ;;  %v1920_v55 = vld [vmem:[%s2571_s25 + $0x40] sm:$0xff] }
 0x944   : > { %v1751_v62 = vsel %vm1059_vm9, %v2341_v56, 0.0 }
 0x945   : > { %1752 = vadd.xlane.f32.xlu0 %v1751_v62 }
 0x9b6   : > { %v1750_v57 = vpop.xlane.xlu1 %1749 }
 0x9b7   : > { %2342 = vrcp.f32 %v1750_v57 }
 0x9b8   : > { %v1753_v58 = vpop.xlane.xlu0 %1752 }
 0x9b9   : > { %2344 = vrcp.f32 %v1753_v58 }
 0x9bd   : > { %v2343_v59 = vpop.eup %2342 }
 0x9be   : > { %v1756_v60 = vmul.f32 %v2343_v59, %v2339_v54  ;;  %v1933_v54 = vpack.c.bf16 %v1923_v14, %v1922_v51 }
 0x9bf   : > { %v2345_v61 = vpop.eup %2344 }
 0x9c0   : > { %v1758_v63 = vpack.c.bf16 %v1756_v60, %v1756_v60  ;;  %v1757_v0 = vmul.f32 %v2345_v61, %v2341_v56  ;;  %v1921_v56 = vld [vmem:[%s2571_s25 + $0x48] sm:$0xff]  ;;  %1942 = vmatpush.bf16.msrb.mxu1 %v1933_v54 }
 0x9c1   : > { %v1932_v58 = vpack.c.bf16 %v1921_v56, %v1920_v55 }
 0x9c2   : > { %v1759_v1 = vpack.c.bf16 %v1757_v0, %v1757_v0  ;;  %2267 = vmatmul.msk.bf16.vlgmr.msra.gmra.mxu1 %vm1059_vm9, %v1758_v63 }
 0x9c4   : > { %2268 = vmatmul.msk.bf16.vlgmr.msra.gmra.mxu2 %vm1059_vm9, %v1759_v1  ;;  %1943 = vmatpush.bf16.msrb.mxu1 %v1932_v58 }
 0xa3f   : > { %v1777_v5 = vpop.f32.mrf.mxu1 }
 0xa47   : > { %v1779_v6 = vpop.f32.mrf.mxu1  ;;  %v1796_v7 = vpop.f32.mrf.mxu2 }
 0xa48   : > { %v1800_v8 = vpack.c.bf16 %v1796_v7, %v1777_v5  ;;  %v2305_v7 = vld [vmem:[%s770_s15] ss:$0 sm:$0xff] }
 0xa4a   : > { %2269 = vmatmul.msk.bf16.vlgmr.msrb.gmra.mxu3 %vm1059_vm9, %v1800_v8 }
 0xa4f   : > { %v1798_v9 = vpop.f32.mrf.mxu2 }
 0xacd   : > { %v1816_v11 = vpop.f32.mrf.mxu3 }
 0xace   : > { %v1821_v13 = vadd.f32 %v1816_v11, %v1610_v37 }
 0xad0   : > { %v2778_v17 = vadd.f32 %v2350_v16, %v1821_v13 }
 0xad2   : > { %v1827_v18 = vsel %vm801_vm1, %v2778_v17, 0.0 }
 0xad3   : > { %1828 = vadd.xlane.f32.xlu2 %v1827_v18 }
 0xad5   : > { %v1818_v19 = vpop.f32.mrf.mxu3 }
 0xad6   : > { %v1822_v21 = vadd.f32 %v1818_v19, %v1611_v39  ;;  %v1883_v39 = vld [vmem:[%s2562_s6 + $0x8] sm:$0xff]  ;;  %v1918_v19 = vld [vmem:[%s2571_s25 + $0x30] sm:$0xff] }
 0xad7   : > { %v1886_v40 = vpack.c.bf16 %v1883_v39, %v1882_v38  ;;  %v2307_v39 = vld [vmem:[%s786_s21] ss:$0 sm:$0xff]  ;;  %s2927_s21 = sld [smem:[#allocation17_spill]] (!%p2271_p5) }
 0xad8   : > { %v2782_v23 = vadd.f32 %v2351_v22, %v1822_v21  ;;  %v1919_v21 = vld [vmem:[%s2571_s25 + $0x38] sm:$0xff] }
 0xad9   : > { %1902 = vmatpush.bf16.msra.mxu0 %v1886_v40  ;;  %v1931_v22 = vpack.c.bf16 %v1919_v21, %v1918_v19 }
 0xada   : > { %v1830_v34 = vsel %vm801_vm1, %v2782_v23, 0.0 }
 0xadb   : > { %1831 = vadd.xlane.f32.xlu0 %v1830_v34  ;;  %1944 = vmatpush.bf16.msrb.mxu1 %v1931_v22  ;;  %v1916_v34 = vld [vmem:[%s2571_s25 + $0x20] sm:$0xff] }
 0xb46   : > { %v1829_v24 = vpop.xlane.xlu2 %1828 }
 0xb47   : > { %v1833_v20 = vmul.f32 %v1829_v24, %v2586_v12  ;;  %v1917_v24 = vld [vmem:[%s2571_s25 + $0x28] sm:$0xff] }
 0xb49   : > { %v1835_v32 = vsub.f32 %v2778_v17, %v1833_v20  ;;  %v1930_v20 = vpack.c.bf16 %v1917_v24, %v1916_v34 }
 0xb4b   : > { %v1837_v25 = vmul.f32 %v1835_v32, %v1835_v32  ;;  %1945 = vmatpush.bf16.msrb.mxu1 %v1930_v20 }
 0xb4d   : > { %v1839_v26 = vsel %vm801_vm1, %v1837_v25, 0.0  ;;  %v1915_v25 = vld [vmem:[%s2571_s25 + $0x18] sm:$0xff] }
 0xb4e   : > { %1840 = vadd.xlane.f32.xlu1 %v1839_v26  ;;  %v1832_v27 = vpop.xlane.xlu0 %1831 }
 0xb4f   : > { %v1834_v28 = vmul.f32 %v1832_v27, %v2586_v12  ;;  %v1912_v27 = vld [vmem:[%s2571_s25] sm:$0xff] }
 0xb51   : > { %v1836_v29 = vsub.f32 %v2782_v23, %v1834_v28  ;;  %v1913_v28 = vld [vmem:[%s2571_s25 + $0x8] sm:$0xff] }
 0xb53   : > { %v1838_v30 = vmul.f32 %v1836_v29, %v1836_v29 }
 0xb55   : > { %v1842_v31 = vsel %vm801_vm1, %v1838_v30, 0.0 }
 0xb56   : > { %1843 = vadd.xlane.f32.xlu2 %v1842_v31  ;;  %v2306_v31 = vld [vmem:[%s778_s7] ss:$0 sm:$0xff] }
 0xbc1   : > { %v1841_v36 = vpop.xlane.xlu1 %1840 }
 0xbc2   : > { %v1845_v37 = vmul.f32 %v1841_v36, %v2586_v12 }
 0xbc4   : > { %v1847_v41 = vadd.f32 1e-05, %v1845_v37 }
 0xbc6   : > { %2346 = vrsqrt.f32 %v1847_v41  ;;  %vm1855_vm12 = vweird.f32 %v1847_v41 }
 0xbc9   : > { %v1844_v45 = vpop.xlane.xlu2 %1843 }
 0xbca   : > { %v1846_v48 = vmul.f32 %v1844_v45, %v2586_v12 }
 0xbcc   : > { %v2347_v10 = vpop.eup %2346  ;;  %v1848_v50 = vadd.f32 1e-05, %v1846_v48 }
 0xbcd   : > { %v1850_v52 = vmul.f32 %v2347_v10, %v1847_v41  ;;  %vm1856_vm11 = vweird.f32 %v2347_v10 }
 0xbce   : > { %2348 = vrsqrt.f32 %v1848_v50  ;;  %vm1857_vm13 = vmor %vm1855_vm12, %vm1856_vm11  ;;  %vm1865_vm15 = vweird.f32 %v1848_v50 }
 0xbcf   : > { %v1851_v53 = vmul.f32 %v2347_v10, %v1850_v52 }
 0xbd1   : > { %v1852_v62 = vmul.f32 0.5, %v1851_v53 }
 0xbd3   : > { %v1853_v57 = vsub.f32 1.5, %v1852_v62 }
 0xbd4   : > { %v2349_v59 = vpop.eup %2348 }
 0xbd5   : > { %v1854_v60 = vmul.f32 %v2347_v10, %v1853_v57  ;;  %v1860_v61 = vmul.f32 %v2349_v59, %v1848_v50  ;;  %vm1866_vm14 = vweird.f32 %v2349_v59 }
 0xbd6   : > { %vm1867_vm0 = vmor %vm1865_vm15, %vm1866_vm14 }
 0xbd7   : > { %v1861_v63 = vmul.f32 %v2349_v59, %v1860_v61  ;;  %v1858_v0 = vsel %vm1857_vm13, %v2347_v10, %v1854_v60 }
 0xbd8   : > { %v1869_v4 = vmul.f32 %v1858_v0, %v1835_v32  ;;  %v1914_v32 = vld [vmem:[%s2571_s25 + $0x10] sm:$0xff] }
 0xbd9   : > { %v1862_v1 = vmul.f32 0.5, %v1861_v63  ;;  %v1929_v26 = vpack.c.bf16 %v1915_v25, %v1914_v32 }
 0xbda   : > { %v1874_v8 = vmul.f32 %v2304_v3, %v1869_v4 }
 0xbdb   : > { %v1863_v2 = vsub.f32 1.5, %v1862_v1  ;;  %1946 = vmatpush.bf16.msrb.mxu1 %v1929_v26 }
 0xbdc   : > { %v1879_v13 = vadd.f32 %v2305_v7, %v1874_v8 }
 0xbdd   : > { %v1864_v5 = vmul.f32 %v2349_v59, %v1863_v2 }
 0xbdf   : > { %v1868_v6 = vsel %vm1867_vm0, %v2349_v59, %v1864_v5 }
 0xbe0   : > { %v1870_v9 = vmul.f32 %v1868_v6, %v1836_v29  ;;  %v1928_v29 = vpack.c.bf16 %v1913_v28, %v1912_v27 }
 0xbe2   : > { %v1875_v11 = vmul.f32 %v2304_v3, %v1870_v9  ;;  %1947 = vmatpush.bf16.msrb.mxu1 %v1928_v29 }
 0xbe4   : > { %v1880_v16 = vadd.f32 %v2305_v7, %v1875_v11 }
 0xbe6   : > { %v1881_v18 = vpack.c.bf16 %v1880_v16, %v1879_v13 }
 0xbe8   : > { %2270 = vmatmul.msk.bf16.vlgmr.msra.gmra.mxu0 %vm801_vm1, %v1881_v18 }
 0xc65   : > { %v1904_v30 = vpop.f32.mrf.mxu0 }
 0xc66   : > { %v1905_v15 = vadd.f32 %v2306_v31, %v1904_v30 }
 0xc68   : > { %v1909_v36 = vmax.f32 %v1905_v15, 0.0 }
 0xc6d   : > { %v1906_v33 = vpop.f32.mrf.mxu0 }
 0xc6e   : > { %v1907_v35 = vadd.f32 %v2306_v31, %v1906_v33 }
 0xc70   : > { %v1910_v37 = vmax.f32 %v1907_v35, 0.0 }
 0xc72   : > { %v1911_v38 = vpack.c.bf16 %v1910_v37, %v1909_v36 }
 0xc74   : > { %1948 = vmatmul.bf16.vlgmr.msrb.gmra.mxu1 %v1911_v38 }
 0xcf1   : > { %v1949_v40 = vpop.f32.mrf.mxu1 }
 0xcf2   : > { %v1950_v41 = vadd.f32 %v2307_v39, %v1949_v40 }
 0xcf4   : > { %v1954_v42 = vadd.f32 %v1950_v41, %v2778_v17 }
 0xcf6   : > { %1956 = vst.msk [vmem:[#allocation2] sm:$0xff] %vm801_vm1, %v1954_v42 }
 0xcf9   : > { %v1951_v43 = vpop.f32.mrf.mxu1 }
 0xcfa   : > { %v1952_v44 = vadd.f32 %v2307_v39, %v1951_v43  ;;  %1961 = sbr.rel (%p2271_p5) target bundleno = 3742 (0xe9e), region = 104 }
 0xcfc   : > { %v1955_v45 = vadd.f32 %v1952_v44, %v2782_v23 }
 0xcfe   : > { %1957 = vst.msk [vmem:[#allocation2 + $0x8] sm:$0xff] %vm801_vm1, %v1955_v45 }
 0xcff   : > { %v1964_v46 = vsel %vm801_vm1, %v1954_v42, 0.0  ;;  %v1967_v47 = vsel %vm801_vm1, %v1955_v45, 0.0  ;;  %v2021_v54 = vld [vmem:[%s2927_s21 + $0x10] sm:$0xff]  ;;  %v2022_v55 = vld [vmem:[%s2927_s21 + $0x18] sm:$0xff]  ;;  %v2019_v62 = vld [vmem:[%s2927_s21] sm:$0xff] }
 0xd00   : > { %1965 = vadd.xlane.f32.xlu0 %v1964_v46  ;;  %v2024_v56 = vpack.c.bf16 %v2022_v55, %v2021_v54  ;;  %v2020_v57 = vld [vmem:[%s2927_s21 + $0x8] sm:$0xff]  ;;  %v2353_v20 = vld [vmem:[%s2929_s19] ss:$0 sm:$0xff] }
 0xd01   : > { %v2023_v59 = vpack.c.bf16 %v2020_v57, %v2019_v62  ;;  %v2354_v28 = vld [vmem:[%s2930_s28] ss:$0 sm:$0xff] }
 0xd02   : > { %2038 = vmatpush.bf16.msra.mxu0 %v2024_v56 }
 0xd06   : > { %2039 = vmatpush.bf16.msra.mxu0 %v2023_v59 }
 0xd08   : > { %1968 = vadd.xlane.f32.xlu0 %v1967_v47 }
 0xd73   : > { %v1966_v48 = vpop.xlane.xlu0 %1965 }
 0xd74   : > { %v1970_v17 = vmul.f32 %v1966_v48, %v2586_v12 }
 0xd76   : > { %v1972_v49 = vsub.f32 %v1954_v42, %v1970_v17 }
 0xd78   : > { %v1974_v10 = vmul.f32 %v1972_v49, %v1972_v49 }
 0xd7a   : > { %v1976_v50 = vsel %vm801_vm1, %v1974_v10, 0.0 }
 0xd7b   : > { %1977 = vadd.xlane.f32.xlu1 %v1976_v50  ;;  %v1969_v23 = vpop.xlane.xlu0 %1968 }
 0xd7c   : > { %v1971_v51 = vmul.f32 %v1969_v23, %v2586_v12 }
 0xd7e   : > { %v1973_v14 = vsub.f32 %v1955_v45, %v1971_v51 }
 0xd80   : > { %v1975_v52 = vmul.f32 %v1973_v14, %v1973_v14 }
 0xd82   : > { %v1979_v53 = vsel %vm801_vm1, %v1975_v52, 0.0 }
 0xd83   : > { %1980 = vadd.xlane.f32.xlu1 %v1979_v53 }
 0xdee   : > { %v1978_v58 = vpop.xlane.xlu1 %1977 }
 0xdef   : > { %v1982_v60 = vmul.f32 %v1978_v58, %v2586_v12 }
 0xdf1   : > { %v1984_v61 = vadd.f32 1e-05, %v1982_v60 }
 0xdf3   : > { %2355 = vrsqrt.f32 %v1984_v61  ;;  %vm1992_vm3 = vweird.f32 %v1984_v61 }
 0xdf6   : > { %v1981_v63 = vpop.xlane.xlu1 %1980 }
 0xdf7   : > { %v1983_v0 = vmul.f32 %v1981_v63, %v2586_v12  ;;  %v2352_v12 = vld [vmem:[%s2928_s0] ss:$0 sm:$0xff] }
 0xdf9   : > { %v2356_v1 = vpop.eup %2355  ;;  %v1985_v2 = vadd.f32 1e-05, %v1983_v0 }
 0xdfa   : > { %v1987_v3 = vmul.f32 %v2356_v1, %v1984_v61  ;;  %vm1993_vm2 = vweird.f32 %v2356_v1 }
 0xdfb   : > { %2357 = vrsqrt.f32 %v1985_v2  ;;  %vm1994_vm4 = vmor %vm1992_vm3, %vm1993_vm2  ;;  %vm2002_vm6 = vweird.f32 %v1985_v2 }
 0xdfc   : > { %v1988_v4 = vmul.f32 %v2356_v1, %v1987_v3 }
 0xdfe   : > { %v1989_v5 = vmul.f32 0.5, %v1988_v4 }
 0xe00   : > { %v1990_v6 = vsub.f32 1.5, %v1989_v5 }
 0xe01   : > { %v2358_v7 = vpop.eup %2357 }
 0xe02   : > { %v1991_v8 = vmul.f32 %v2356_v1, %v1990_v6  ;;  %v1997_v9 = vmul.f32 %v2358_v7, %v1985_v2  ;;  %vm2003_vm5 = vweird.f32 %v2358_v7 }
 0xe03   : > { %vm2004_vm7 = vmor %vm2002_vm6, %vm2003_vm5 }
 0xe04   : > { %v1998_v11 = vmul.f32 %v2358_v7, %v1997_v9  ;;  %v1995_v16 = vsel %vm1994_vm4, %v2356_v1, %v1991_v8 }
 0xe05   : > { %v2006_v19 = vmul.f32 %v1995_v16, %v1972_v49 }
 0xe06   : > { %v1999_v13 = vmul.f32 0.5, %v1998_v11 }
 0xe07   : > { %v2011_v24 = vmul.f32 %v2352_v12, %v2006_v19 }
 0xe08   : > { %v2000_v18 = vsub.f32 1.5, %v1999_v13 }
 0xe09   : > { %v2016_v25 = vadd.f32 %v2353_v20, %v2011_v24 }
 0xe0a   : > { %v2001_v21 = vmul.f32 %v2358_v7, %v2000_v18 }
 0xe0c   : > { %v2005_v22 = vsel %vm2004_vm7, %v2358_v7, %v2001_v21 }
 0xe0d   : > { %v2007_v34 = vmul.f32 %v2005_v22, %v1973_v14 }
 0xe0f   : > { %v2012_v32 = vmul.f32 %v2352_v12, %v2007_v34 }
 0xe11   : > { %v2017_v26 = vadd.f32 %v2353_v20, %v2012_v32 }
 0xe13   : > { %v2018_v27 = vpack.c.bf16 %v2017_v26, %v2016_v25 }
 0xe15   : > { %2272 = vmatmul.msk.bf16.vlgmr.msra.gmra.mxu0 %vm801_vm1, %v2018_v27 }
 0xe92   : > { %v2041_v29 = vpop.f32.mrf.mxu0 }
 0xe93   : > { %v2042_v30 = vadd.f32 %v2354_v28, %v2041_v29 }
 0xe95   : > { %2046 = vst [vmem:[#allocation3] sm:$0xff] %v2042_v30 }
 0xe9a   : > { %v2043_v31 = vpop.f32.mrf.mxu0 }
 0xe9b   : > { %v2044_v15 = vadd.f32 %v2354_v28, %v2043_v31 }
 0xe9d   : > { %2047 = vst [vmem:[#allocation3 + $0x8] sm:$0xff] %v2044_v15 }
 0xe9e PF: > { %p2287_p6 = scmp.eq.s32.totalorder %s2509_s30, 1  ;;  %s2400_s15 = smov [#allocation3]  }
 0xe9f   : > { %s2053_s26 = sshll.u32 %s2400_s15, 4  ;;  %s2931_s7 = sld [smem:[#allocation19_spill]]  ;;  %s2054_s26 = int_to_ptr.vmem [resolvable:$true] %s2053_s26 }
 0xea0   : > { %s2401_s25 = smov 128   ;;  %s2402_s3 = smov 8  }
 0xea5   : > { %s2055_s20 = sshll.u32 %s2931_s7, 4  ;;  %s2056_s20 = int_to_ptr.hbm [resolvable:$true] %s2055_s20 }
 0xea6   : > { %2284 = dma.vmem_to_hbm [thread:$0]  (%p2287_p6), %s2054_s26, 256, %s2056_s20, [#allocation4], %s2401_s25, %s2401_s25, %s2402_s3  }
 0xea7   : > { %2392 = dma.done.wait (%p2287_p6), [#allocation4], 256  }
 0xea8   : > { %2394 = vsyncadd (%p2287_p6), [#allocation4], 4294967040 }
 0xea9 PF: > { %s2932_s4 = sld [smem:[#allocation6_spill]] }
 0xeaf   : > { %s30_s0 = sadd.s32 1, %s2932_s4  }
 0xeb0   : > { %p27_p7 = scmp.ge.s32.totalorder %s30_s0, 4  }
 0xeb2   :  { %29 = sbr.rel (!%p27_p7) target bundleno = 15 (0xf), region = 167 }
 0xeb7   :  { %2072 = vsyncpa [#allocation4], 1 }
 0xeb8   :  { %2074 = vsyncpa [#allocation4 + $0x1], 1 }

</bundles_post_ra>
